<compile_context>
chip_gen: v7x
topology: tpu7x:2x2x1
jax: 0.10.0
libtpu: 0.0.40
codegen_flags: <defaults>
</compile_context>

<pallas_src>
import functools

import jax
import jax.numpy as jnp
from jax.experimental import pallas as pl
from jax.experimental.pallas import tpu as pltpu


LANE = 128


def _round_up(x, m):
    return ((x + m - 1) // m) * m


def _divisor_tile(m, candidates):
    for t in candidates:
        if m % t == 0:
            return t
    return None


@functools.lru_cache(maxsize=None)
def _gemm_caps():
    """(tm_cap, tk_cap, vmem_limit_bytes) gated on physical VMEM.
    128 MiB chips (v5e/v6e): big tiles + raised scoped-VMEM limit.
    64 MiB chips (v7x) / unknown: cap the double-buffered working set, keep default limit."""
    try:
        vmem = int(pltpu.get_tpu_info().vmem_capacity_bytes)
    except Exception:
        vmem = 64 << 20
    if vmem >= (100 << 20):
        return 1024, 8192, 100 << 20
    return 512, 2048, None


def _k_tile(k, cap):
    if k <= cap:
        return k
    for t in range(cap - cap % LANE, 0, -LANE):
        if k % t == 0:
            return t
    return k


# ----------------------------------------------------------------------------
# GEMM kernel: acc += act(affine(A)) @ B over the K grid axis, bias/tanh epilogue
# ----------------------------------------------------------------------------
def _gemm_kernel(*refs, has_affine, has_bias, pre_act, post_act):
    a_ref, b_ref = refs[0], refs[1]
    idx = 2
    scale_ref = shift_ref = bias_ref = None
    if has_affine:
        scale_ref, shift_ref = refs[idx], refs[idx + 1]
        idx += 2
    if has_bias:
        bias_ref = refs[idx]
        idx += 1
    o_ref, acc_ref = refs[idx], refs[idx + 1]

    kk = pl.program_id(1)

    @pl.when(kk == 0)
    def _init():
        acc_ref[...] = jnp.zeros_like(acc_ref)

    a = a_ref[...]
    if has_affine or pre_act is not None:
        a = a.astype(jnp.float32)
        if has_affine:                       # deferred BatchNorm affine, per K column
            a = a * scale_ref[...] + shift_ref[...]
        if pre_act == "leaky_relu":
            a = jnp.where(a >= 0, a, a * 0.2)
        elif pre_act == "relu":
            a = jnp.maximum(a, 0.0)
        a = a.astype(b_ref.dtype)
    acc_ref[...] += jnp.dot(a, b_ref[...], preferred_element_type=jnp.float32)

    @pl.when(kk == pl.num_programs(1) - 1)
    def _fin():
        y = acc_ref[...]
        if has_bias:
            y = y + bias_ref[...]
        if post_act == "tanh":
            y = jnp.tanh(y)
        o_ref[...] = y.astype(o_ref.dtype)


def pallas_gemm(a, b, scale=None, shift=None, bias=None, pre_act=None,
                post_act=None, out_dtype=jnp.bfloat16):
    """(M, K) @ (K, N); N must be lane-dense (multiple of 128); M is padded internally to a
    multiple of 16 (bf16 sublane tiling).  Optional fused per-column affine (deferred BN),
    pre-activation on A, bias + tanh epilogue.  f32 accumulation in VMEM scratch."""
    M, K = a.shape
    Kb, N = b.shape
    assert K == Kb and N % LANE == 0
    tm_cap, tk_cap, vmem_limit = _gemm_caps()

    Mp = _round_up(M, 16)
    if Mp != M:
        a = jnp.pad(a, ((0, Mp - M), (0, 0)))
    tm = _divisor_tile(Mp, tuple(t for t in (1024, 512, 256, 128, 64, 32, 16) if t <= tm_cap))
    tk = _k_tile(K, tk_cap)

    in_specs = [pl.BlockSpec((tm, tk), lambda i, k: (i, k)),
                pl.BlockSpec((tk, N), lambda i, k: (k, 0))]
    inputs = [a, b]
    if scale is not None:
        in_specs += [pl.BlockSpec((1, tk), lambda i, k: (0, k)),
                     pl.BlockSpec((1, tk), lambda i, k: (0, k))]
        inputs += [scale, shift]
    if bias is not None:
        in_specs.append(pl.BlockSpec((1, N), lambda i, k: (0, 0)))
        inputs.append(bias)

    out_bytes = jnp.dtype(out_dtype).itemsize
    cost = pl.CostEstimate(
        flops=2 * Mp * K * N,
        transcendentals=(Mp * N) if post_act == "tanh" else 0,
        bytes_accessed=Mp * K * a.dtype.itemsize + K * N * b.dtype.itemsize + Mp * N * out_bytes)

    cp = dict(dimension_semantics=("parallel", "arbitrary"))
    if vmem_limit is not None:
        cp["vmem_limit_bytes"] = vmem_limit

    out = pl.pallas_call(
        functools.partial(_gemm_kernel, has_affine=scale is not None,
                          has_bias=bias is not None, pre_act=pre_act, post_act=post_act),
        out_shape=jax.ShapeDtypeStruct((Mp, N), out_dtype),
        grid=(Mp // tm, K // tk),
        in_specs=in_specs,
        out_specs=pl.BlockSpec((tm, N), lambda i, k: (i, 0)),
        scratch_shapes=[pltpu.VMEM((tm, N), jnp.float32)],
        compiler_params=pltpu.CompilerParams(**cp),
        cost_estimate=cost,
    )(*inputs)
    return out if Mp == M else out[:M]


# ----------------------------------------------------------------------------
# BatchNorm2d (train-mode batch stats) -> per-channel (scale, shift); apply is deferred
# ----------------------------------------------------------------------------
def _bn_stats_kernel(x_ref, s_ref, q_ref, s_acc, q_acc):
    i = pl.program_id(0)

    @pl.when(i == 0)
    def _init():
        s_acc[...] = jnp.zeros_like(s_acc)
        q_acc[...] = jnp.zeros_like(q_acc)

    x = x_ref[...].astype(jnp.float32)
    s_acc[...] += jnp.sum(x, axis=0, keepdims=True)
    q_acc[...] += jnp.sum(x * x, axis=0, keepdims=True)

    @pl.when(i == pl.num_programs(0) - 1)
    def _fin():
        s_ref[...] = s_acc[...]
        q_ref[...] = q_acc[...]


def pallas_bn_scale_shift(x_nhwc, gamma, beta, eps=1e-5):
    """Tiled, lane-dense reduction of sum / sumsq; tiny per-channel fold + scale/shift math
    stays in XLA.  The affine itself is folded into the consumer GEMM (no apply pass)."""
    N, H, W, C = x_nhwc.shape
    M = N * H * W
    if C < LANE and LANE % C == 0 and (M * C) % LANE == 0:
        x2 = x_nhwc.reshape(M * C // LANE, LANE)          # lane-dense view (channel = lane % C)
    else:
        x2 = x_nhwc.reshape(M, C)
    R, L = x2.shape
    tr = _divisor_tile(R, (1024, 512, 256, 128, 64, 32, 16, 8)) or R

    s, q = pl.pallas_call(
        _bn_stats_kernel,
        out_shape=(jax.ShapeDtypeStruct((1, L), jnp.float32),
                   jax.ShapeDtypeStruct((1, L), jnp.float32)),
        grid=(R // tr,),
        in_specs=[pl.BlockSpec((tr, L), lambda i: (i, 0))],
        out_specs=(pl.BlockSpec((1, L), lambda i: (0, 0)),
                   pl.BlockSpec((1, L), lambda i: (0, 0))),
        scratch_shapes=[pltpu.VMEM((1, L), jnp.float32),
                        pltpu.VMEM((1, L), jnp.float32)],
        compiler_params=pltpu.CompilerParams(dimension_semantics=("arbitrary",)),
    )(x2)

    s = s.reshape(-1, C).sum(axis=0)
    q = q.reshape(-1, C).sum(axis=0)
    mean = s / M
    var = jnp.maximum(q / M - mean * mean, 0.0)
    scale = gamma * jax.lax.rsqrt(var + eps)
    shift = beta - mean * scale
    return scale, shift


# ----------------------------------------------------------------------------
# Convolution wrappers (space-to-depth / fused sub-pixel phases -> one GEMM each)
# ----------------------------------------------------------------------------
def _bn_pad_value(scale, shift):
    """Per-channel pad value v with v*scale + shift == 0, so padded taps behave exactly like
    the zero padding the reference applies *after* the BatchNorm."""
    safe = jnp.where(jnp.abs(scale) > 1e-12, scale, 1.0)
    return jnp.where(jnp.abs(scale) > 1e-12, -shift / safe, 0.0)


def _pad_hw(x, pad_h, pad_w, pad_vec=None):
    cfg = ((0, 0), pad_h, pad_w, (0, 0))
    if pad_vec is None:
        return jnp.pad(x, cfg)
    pv = pad_vec.reshape(1, 1, 1, -1)
    return (jnp.pad(x.astype(jnp.float32) - pv, cfg) + pv).astype(x.dtype)


def _patches_2x2(x):
    """x: (N, Hp, Wp, C) -> 2x2 stride-1 patches (N*(Hp-1)*(Wp-1), 4*C), columns (di, dj, c)."""
    N, Hp, Wp, C = x.shape
    Ho, Wo = Hp - 1, Wp - 1
    cols = [x[:, di:di + Ho, dj:dj + Wo, :] for di in (0, 1) for dj in (0, 1)]
    return jnp.concatenate(cols, axis=-1).reshape(N * Ho * Wo, 4 * C), Ho, Wo


def conv4x4_s2(x, scale_c, shift_c, wm, cout, pre_act=None):
    """Conv2d(k=4, s=2, p=1, bias=False) on NHWC bf16 x as a 2x2 stride-1 GEMM over the
    space-to-depth input.  Deferred BN (scale_c/shift_c) + LeakyReLU fused into the GEMM."""
    N, H, W, C = x.shape
    pv = None if scale_c is None else _bn_pad_value(scale_c, shift_c)
    xp = _pad_hw(x, (1, 1), (1, 1), pv)
    Hp, Wp = H + 2, W + 2
    xs = xp.reshape(N, Hp // 2, 2, Wp // 2, 2, C)
    xs = xs.transpose(0, 1, 3, 2, 4, 5).reshape(N, Hp // 2, Wp // 2, 4 * C)
    a, Ho, Wo = _patches_2x2(xs)                      # K columns: 16 taps x C (channel fastest)
    scale_k = None if scale_c is None else jnp.tile(scale_c, 16).reshape(1, -1)
    shift_k = None if shift_c is None else jnp.tile(shift_c, 16).reshape(1, -1)
    y = pallas_gemm(a, wm, scale=scale_k, shift=shift_k, pre_act=pre_act)
    return y[:, :cout].reshape(N, Ho, Wo, cout)


def conv_transpose4x4_s2(x, scale_c, shift_c, wm, cout, bias=None,
                         pre_act="relu", post_act=None, out_dtype=jnp.bfloat16):
    """ConvTranspose2d(k=4, s=2, p=1) as ONE GEMM: the 4 sub-pixel phase weights are
    concatenated along the output dim and share a single im2col of the once-padded input.
    Each phase output is a shifted (H, W) window of the (H+1, W+1) GEMM result."""
    N, H, W, C = x.shape
    pv = None if scale_c is None else _bn_pad_value(scale_c, shift_c)
    xp = _pad_hw(x, (1, 1), (1, 1), pv)
    a, Ho, Wo = _patches_2x2(xp)                      # Ho = H+1, Wo = W+1, K = 4*C
    scale_k = None if scale_c is None else jnp.tile(scale_c, 4).reshape(1, -1)
    shift_k = None if shift_c is None else jnp.tile(shift_c, 4).reshape(1, -1)
    y = pallas_gemm(a, wm, scale=scale_k, shift=shift_k, bias=bias,
                    pre_act=pre_act, post_act=post_act, out_dtype=out_dtype)
    y = y[:, :4 * cout].reshape(N, Ho, Wo, 2, 2, cout)
    parts = [y[:, r:r + H, s:s + W, r, s, :] for r in (0, 1) for s in (0, 1)]
    y4 = jnp.stack(parts, axis=0).reshape(2, 2, N, H, W, cout)
    return y4.transpose(2, 3, 0, 4, 1, 5).reshape(N, 2 * H, 2 * W, cout)


# ----------------------------------------------------------------------------
# Weight preparation (done once, outside the per-call path)
# ----------------------------------------------------------------------------
def _pad_cols(w):
    n = w.shape[1]
    npad = _round_up(n, LANE)
    return w if npad == n else jnp.pad(w, ((0, 0), (0, npad - n)))   # lane-dense outputs


def _conv4x4_to_gemm(w):
    """Conv2d weight (Cout, Cin, 4, 4) -> (16*Cin, Cout) matching the s2d 2x2-patch layout."""
    Cout, Cin = w.shape[:2]
    w6 = w.reshape(Cout, Cin, 2, 2, 2, 2)             # (co, c, p, u, q, v); kh=2p+u, kw=2q+v
    return w6.transpose(2, 4, 3, 5, 1, 0).reshape(16 * Cin, Cout)


def _convT4x4_to_gemm_fused(w):
    """ConvTranspose2d weight (Cin, Cout, 4, 4) -> (4*Cin, 4*Cout): the 4 sub-pixel phase GEMM
    matrices (rows ordered (di, dj, cin)) concatenated along the output dim, phase order
    (0,0),(0,1),(1,0),(1,1)."""
    Cin, Cout = w.shape[:2]
    w_eff = jnp.transpose(w[:, :, ::-1, ::-1], (1, 0, 2, 3))        # (Cout, Cin, 4, 4), flipped
    mats = []
    for r in (0, 1):
        for s in (0, 1):
            kr = w_eff[:, :, r::2, s::2]                            # (Cout, Cin, 2, 2)
            mats.append(jnp.transpose(kr, (2, 3, 1, 0)).reshape(4 * Cin, Cout))
    return jnp.concatenate(mats, axis=1)


def prepare_params(p):
    """Rearrange PyTorch weights into lane-dense bf16 GEMM layout once (not per call).
    Returns (array pytree for jit, static Python config with real channel counts)."""
    def prep(bp, outermost=False):
        arrs = {"down_wm": _pad_cols(_conv4x4_to_gemm(bp["down_w"])).astype(jnp.bfloat16),
                "up_wm": _pad_cols(_convT4x4_to_gemm_fused(bp["up_w"])).astype(jnp.bfloat16)}
        cfg = {"down_cout": int(bp["down_w"].shape[0]),
               "up_cout": int(bp["up_w"].shape[1])}
        if "down_gamma" in bp:
            arrs["down_gamma"], arrs["down_beta"] = bp["down_gamma"], bp["down_beta"]
        if outermost:
            n_pad = arrs["up_wm"].shape[1]
            b4 = jnp.tile(bp["up_b"], 4)                             # bias per fused phase column
            arrs["up_bias"] = jnp.pad(b4, (0, n_pad - b4.shape[0])).reshape(1, n_pad).astype(jnp.float32)
        else:
            arrs["up_gamma"], arrs["up_beta"] = bp["up_gamma"], bp["up_beta"]
        return arrs, cfg

    arrs, cfg = {}, {}
    for name, outer in (("inner", False), ("mid", False), ("outer", True)):
        arrs[name], cfg[name] = prep(p[name], outermost=outer)
    return arrs, cfg


# ----------------------------------------------------------------------------
# UnetSkipConnectionBlock forward (BatchNorm2d norm_layer -> use_bias=False convs,
# use_dropout=False; freshly constructed module -> train-mode batch statistics)
# ----------------------------------------------------------------------------
def unet_block(x, x_scale, x_shift, p, c, *, outermost=False, submodule=None):
    """Activations are carried as (raw bf16 NHWC, per-channel BN scale, per-channel BN shift)
    with the BN affine deferred into the consuming GEMM."""
    # down: [downconv] (outermost) | [LeakyReLU, downconv] (innermost) | [LeakyReLU, downconv, BN]
    h = conv4x4_s2(x, x_scale, x_shift, p["down_wm"], c["down_cout"],
                   pre_act=None if outermost else "leaky_relu")
    if "down_gamma" in p:
        h_scale, h_shift = pallas_bn_scale_shift(h, p["down_gamma"], p["down_beta"])
    else:
        h_scale = h_shift = None
    if submodule is not None:
        h, h_scale, h_shift = submodule(h, h_scale, h_shift)
    # up: [ReLU, upconv, Tanh] (outermost) | [ReLU, upconv, BN] (+ skip cat) otherwise
    if outermost:
        return conv_transpose4x4_s2(h, h_scale, h_shift, p["up_wm"], c["up_cout"],
                                    bias=p["up_bias"], pre_act="relu", post_act="tanh",
                                    out_dtype=jnp.float32)
    y = conv_transpose4x4_s2(h, h_scale, h_shift, p["up_wm"], c["up_cout"], pre_act="relu")
    y_scale, y_shift = pallas_bn_scale_shift(y, p["up_gamma"], p["up_beta"])
    cx = x.shape[-1]
    x_scale = jnp.ones((cx,), jnp.float32) if x_scale is None else x_scale
    x_shift = jnp.zeros((cx,), jnp.float32) if x_shift is None else x_shift
    return (jnp.concatenate([x, y], axis=-1),            # torch.cat([x, model(x)], 1), BN deferred
            jnp.concatenate([x_scale, y_scale]),
            jnp.concatenate([x_shift, y_shift]))


def unet_forward(x_nchw, pp, cfg):
    x = jnp.transpose(x_nchw, (0, 2, 3, 1)).astype(jnp.bfloat16)     # NCHW -> NHWC bf16
    inner = lambda h, s, b: unet_block(h, s, b, pp["inner"], cfg["inner"])
    mid = lambda h, s, b: unet_block(h, s, b, pp["mid"], cfg["mid"], submodule=inner)
    y = unet_block(x, None, None, pp["outer"], cfg["outer"], outermost=True, submodule=mid)
    return jnp.transpose(y, (0, 3, 1, 2))                            # NHWC -> NCHW (f32)


def init_unet_params(key, input_nc, output_nc, ngf):
    def nxt():
        nonlocal key
        key, sub = jax.random.split(key)
        return sub

    w = lambda shape: (0.02 * jax.random.normal(nxt(), shape, jnp.float32))
    return {
        # innermost: outer_nc=2*ngf, inner_nc=4*ngf, input_nc=2*ngf
        "inner": {"down_w": w((4 * ngf, 2 * ngf, 4, 4)),
                  "up_w": w((4 * ngf, 2 * ngf, 4, 4)),
                  "up_gamma": jnp.ones((2 * ngf,), jnp.float32),
                  "up_beta": jnp.zeros((2 * ngf,), jnp.float32)},
        # middle: outer_nc=ngf, inner_nc=2*ngf, input_nc=ngf
        "mid": {"down_w": w((2 * ngf, ngf, 4, 4)),
                "down_gamma": jnp.ones((2 * ngf,), jnp.float32),
                "down_beta": jnp.zeros((2 * ngf,), jnp.float32),
                "up_w": w((4 * ngf, ngf, 4, 4)),
                "up_gamma": jnp.ones((ngf,), jnp.float32),
                "up_beta": jnp.zeros((ngf,), jnp.float32)},
        # outermost: outer_nc=output_nc, inner_nc=ngf, input_nc=input_nc
        "outer": {"down_w": w((ngf, input_nc, 4, 4)),
                  "up_w": w((2 * ngf, output_nc, 4, 4)),
                  "up_b": w((output_nc,))},
    }


# ----------------------------------------------------------------------------
# Pure-JAX reference (XLA convs) of the same module, used for verification only
# ----------------------------------------------------------------------------
def _ref_conv(x, w, stride, padding):
    return jax.lax.conv_general_dilated(
        x, w, window_strides=(stride, stride),
        padding=[(padding, padding), (padding, padding)],
        dimension_numbers=("NHWC", "OIHW", "NHWC"))


def _ref_convT(x, w, bias=None):
    Cout = w.shape[1]
    w_eff = jnp.transpose(w[:, :, ::-1, ::-1], (1, 0, 2, 3))
    y = jax.lax.conv_general_dilated(
        x, w_eff, window_strides=(1, 1), padding=[(2, 2), (2, 2)],
        lhs_dilation=(2, 2), dimension_numbers=("NHWC", "OIHW", "NHWC"))
    if bias is not None:
        y = y + bias.reshape(1, 1, 1, Cout)
    return y


def _ref_bn(x, gamma, beta, eps=1e-5):
    mean = jnp.mean(x, axis=(0, 1, 2), keepdims=True)
    var = jnp.mean(jnp.square(x - mean), axis=(0, 1, 2), keepdims=True)
    return (x - mean) * jax.lax.rsqrt(var + eps) * gamma.reshape(1, 1, 1, -1) \
        + beta.reshape(1, 1, 1, -1)


def _ref_block(x, p, *, outermost=False, submodule=None):
    lrelu = lambda t: jnp.where(t >= 0, t, 0.2 * t)
    relu = lambda t: jnp.maximum(t, 0.0)
    h = x if outermost else lrelu(x)
    h = _ref_conv(h, p["down_w"], 2, 1)
    if "down_gamma" in p:
        h = _ref_bn(h, p["down_gamma"], p["down_beta"])
    if submodule is not None:
        h = submodule(h)
    if outermost:
        return jnp.tanh(_ref_convT(relu(h), p["up_w"], p.get("up_b")))
    y = _ref_bn(_ref_convT(relu(h), p["up_w"]), p["up_gamma"], p["up_beta"])
    return jnp.concatenate([x, y], axis=-1)


def unet_reference(x_nchw, p):
    x = jnp.transpose(x_nchw, (0, 2, 3, 1))
    inner = lambda h: _ref_block(h, p["inner"])
    mid = lambda h: _ref_block(h, p["mid"], submodule=inner)
    y = _ref_block(x, p["outer"], outermost=True, submodule=mid)
    return jnp.transpose(y, (0, 3, 1, 2))


# ----------------------------------------------------------------------------
# Demo
# ----------------------------------------------------------------------------
if __name__ == "__main__":
    INPUT_NC, OUTPUT_NC, NGF = 4, 3, 8
    B, H, W = 2, 16, 16

    key = jax.random.PRNGKey(0)
    kx, kp = jax.random.split(key)
    x = jax.random.normal(kx, (B, INPUT_NC, H, W), jnp.float32)

    params = init_unet_params(kp, INPUT_NC, OUTPUT_NC, NGF)
    pp, cfg = prepare_params(params)          # lane-dense bf16 GEMM weights, built once

    fwd = jax.jit(functools.partial(unet_forward, cfg=cfg))
    y = jax.block_until_ready(fwd(x, pp))

    assert y.shape == (B, OUTPUT_NC, H, W), y.shape
    assert bool(jnp.all(jnp.isfinite(y)))
    assert float(jnp.max(jnp.abs(y))) <= 1.0 + 1e-5   # tanh output range

    # Verify against a pure-JAX f32 reference of the same module (bf16 MXU tolerance).
    y_ref = unet_reference(x, params)
    err = float(jnp.max(jnp.abs(y - y_ref)))
    assert err < 0.1, f"max abs diff vs reference = {err}"

    print("KERNEL_OK")
</pallas_src>

<mosaic_0001>
module attributes {stable_mosaic.version = 11 : i64} {
  func.func @_gemm_kernel(%arg0: i32, %arg1: i32, %arg2: memref<128x64xbf16, #tpu.memory_space<vmem>>, %arg3: memref<64x128xbf16, #tpu.memory_space<vmem>>, %arg4: memref<128x128xbf16, #tpu.memory_space<vmem>>, %arg5: memref<128x128xf32, #tpu.memory_space<vmem>>) attributes {dimension_semantics = [#tpu.dimension_semantics<parallel>, #tpu.dimension_semantics<arbitrary>], iteration_bounds = array<i64: 1, 1>, scalar_prefetch = 0 : i64, scratch_operands = 1 : i64, tpu.core_type = #tpu.core_type<tc>, window_params = [{transform_indices = @transform_0, window_bounds = array<i64: 128, 64>}, {transform_indices = @transform_1, window_bounds = array<i64: 64, 128>}, {transform_indices = @transform_2, window_bounds = array<i64: 128, 128>}]} {
    %c0_i32 = arith.constant 0 : i32
    %0 = arith.cmpi eq, %arg1, %c0_i32 : i32
    %1 = arith.extui %0 : i1 to i32
    %c0_i32_0 = arith.constant 0 : i32
    %2 = arith.cmpi ne, %1, %c0_i32_0 : i32
    scf.if %2 {
      %cst_10 = arith.constant 0.000000e+00 : f32
      %12 = vector.broadcast %cst_10 : f32 to vector<128x128xf32>
      %c0_11 = arith.constant 0 : index
      %c0_12 = arith.constant 0 : index
      %13 = vector.load %arg5[%c0_11, %c0_12] : memref<128x128xf32, #tpu.memory_space<vmem>>, vector<128x128xf32>
      tpu.vector_store %arg5[%c0_11, %c0_12], %12 {strides = array<i32>} : memref<128x128xf32, #tpu.memory_space<vmem>>, vector<128x128xf32>,
    } else {
    }
    %c0 = arith.constant 0 : index
    %c0_1 = arith.constant 0 : index
    %3 = vector.load %arg2[%c0, %c0_1] : memref<128x64xbf16, #tpu.memory_space<vmem>>, vector<128x64xbf16>
    %c0_2 = arith.constant 0 : index
    %c0_3 = arith.constant 0 : index
    %4 = vector.load %arg5[%c0_2, %c0_3] : memref<128x128xf32, #tpu.memory_space<vmem>>, vector<128x128xf32>
    %c0_4 = arith.constant 0 : index
    %c0_5 = arith.constant 0 : index
    %5 = vector.load %arg3[%c0_4, %c0_5] : memref<64x128xbf16, #tpu.memory_space<vmem>>, vector<64x128xbf16>
    %cst = arith.constant dense<0.000000e+00> : vector<128x128xf32>
    %6 = tpu.matmul %3, %5, %cst {dimension_numbers = #tpu.dot_dimension_numbers<[1], [0], [0], [1], [0, 0, 1, 1], [], []>} : vector<128x64xbf16>, vector<64x128xbf16>, vector<128x128xf32> -> vector<128x128xf32>
    %7 = arith.addf %4, %6 : vector<128x128xf32>
    %c0_6 = arith.constant 0 : index
    %c0_7 = arith.constant 0 : index
    %8 = vector.load %arg5[%c0_6, %c0_7] : memref<128x128xf32, #tpu.memory_space<vmem>>, vector<128x128xf32>
    tpu.vector_store %arg5[%c0_6, %c0_7], %7 {strides = array<i32>} : memref<128x128xf32, #tpu.memory_space<vmem>>, vector<128x128xf32>,
    %c0_i32_8 = arith.constant 0 : i32
    %9 = arith.cmpi eq, %arg1, %c0_i32_8 : i32
    %10 = arith.extui %9 : i1 to i32
    %c0_i32_9 = arith.constant 0 : i32
    %11 = arith.cmpi ne, %10, %c0_i32_9 : i32
    scf.if %11 {
      %c0_10 = arith.constant 0 : index
      %c0_11 = arith.constant 0 : index
      %12 = vector.load %arg5[%c0_10, %c0_11] : memref<128x128xf32, #tpu.memory_space<vmem>>, vector<128x128xf32>
      %13 = arith.truncf %12 : vector<128x128xf32> to vector<128x128xbf16>
      %c0_12 = arith.constant 0 : index
      %c0_13 = arith.constant 0 : index
      %14 = vector.load %arg4[%c0_12, %c0_13] : memref<128x128xbf16, #tpu.memory_space<vmem>>, vector<128x128xbf16>
      tpu.vector_store %arg4[%c0_12, %c0_13], %13 {strides = array<i32>} : memref<128x128xbf16, #tpu.memory_space<vmem>>, vector<128x128xbf16>,
    } else {
    }
    return
  }
  func.func @transform_0(%arg0: i32, %arg1: i32) -> (i32, i32) {
    %c0_i32 = arith.constant 0 : i32
    return %arg0, %arg1 : i32, i32
  }
  func.func @transform_1(%arg0: i32, %arg1: i32) -> (i32, i32) {
    %c0_i32 = arith.constant 0 : i32
    %c0_i32_0 = arith.constant 0 : i32
    return %arg1, %c0_i32 : i32, i32
  }
  func.func @transform_2(%arg0: i32, %arg1: i32) -> (i32, i32) {
    %c0_i32 = arith.constant 0 : i32
    %c0_i32_0 = arith.constant 0 : i32
    return %arg0, %c0_i32 : i32, i32
  }
}

module attributes {stable_mosaic.version = 11 : i64} {
  func.func @_gemm_kernel(%arg0: i32, %arg1: i32, %arg2: memref<32x128xbf16, #tpu.memory_space<vmem>>, %arg3: memref<128x128xbf16, #tpu.memory_space<vmem>>, %arg4: memref<32x128xbf16, #tpu.memory_space<vmem>>, %arg5: memref<32x128xf32, #tpu.memory_space<vmem>>) attributes {dimension_semantics = [#tpu.dimension_semantics<parallel>, #tpu.dimension_semantics<arbitrary>], iteration_bounds = array<i64: 1, 1>, scalar_prefetch = 0 : i64, scratch_operands = 1 : i64, tpu.core_type = #tpu.core_type<tc>, window_params = [{transform_indices = @transform_0, window_bounds = array<i64: 32, 128>}, {transform_indices = @transform_1, window_bounds = array<i64: 128, 128>}, {transform_indices = @transform_2, window_bounds = array<i64: 32, 128>}]} {
    %c0_i32 = arith.constant 0 : i32
    %0 = arith.cmpi eq, %arg1, %c0_i32 : i32
    %1 = arith.extui %0 : i1 to i32
    %c0_i32_0 = arith.constant 0 : i32
    %2 = arith.cmpi ne, %1, %c0_i32_0 : i32
    scf.if %2 {
      %cst_12 = arith.constant 0.000000e+00 : f32
      %19 = vector.broadcast %cst_12 : f32 to vector<32x128xf32>
      %c0_13 = arith.constant 0 : index
      %c0_14 = arith.constant 0 : index
      %20 = vector.load %arg5[%c0_13, %c0_14] : memref<32x128xf32, #tpu.memory_space<vmem>>, vector<32x128xf32>
      tpu.vector_store %arg5[%c0_13, %c0_14], %19 {strides = array<i32>} : memref<32x128xf32, #tpu.memory_space<vmem>>, vector<32x128xf32>,
    } else {
    }
    %c0 = arith.constant 0 : index
    %c0_1 = arith.constant 0 : index
    %3 = vector.load %arg2[%c0, %c0_1] : memref<32x128xbf16, #tpu.memory_space<vmem>>, vector<32x128xbf16>
    %4 = arith.extf %3 : vector<32x128xbf16> to vector<32x128xf32>
    %cst = arith.constant 0.000000e+00 : f32
    %5 = vector.broadcast %cst : f32 to vector<32x128xf32>
    %6 = arith.cmpf oge, %4, %5 : vector<32x128xf32>
    %cst_2 = arith.constant 2.000000e-01 : f32
    %7 = vector.broadcast %cst_2 : f32 to vector<32x128xf32>
    %8 = arith.mulf %4, %7 : vector<32x128xf32>
    %9 = arith.select %6, %4, %8 : vector<32x128xi1>, vector<32x128xf32>
    %10 = arith.truncf %9 : vector<32x128xf32> to vector<32x128xbf16>
    %c0_3 = arith.constant 0 : index
    %c0_4 = arith.constant 0 : index
    %11 = vector.load %arg5[%c0_3, %c0_4] : memref<32x128xf32, #tpu.memory_space<vmem>>, vector<32x128xf32>
    %c0_5 = arith.constant 0 : index
    %c0_6 = arith.constant 0 : index
    %12 = vector.load %arg3[%c0_5, %c0_6] : memref<128x128xbf16, #tpu.memory_space<vmem>>, vector<128x128xbf16>
    %cst_7 = arith.constant dense<0.000000e+00> : vector<32x128xf32>
    %13 = tpu.matmul %10, %12, %cst_7 {dimension_numbers = #tpu.dot_dimension_numbers<[1], [0], [0], [1], [0, 0, 1, 1], [], []>} : vector<32x128xbf16>, vector<128x128xbf16>, vector<32x128xf32> -> vector<32x128xf32>
    %14 = arith.addf %11, %13 : vector<32x128xf32>
    %c0_8 = arith.constant 0 : index
    %c0_9 = arith.constant 0 : index
    %15 = vector.load %arg5[%c0_8, %c0_9] : memref<32x128xf32, #tpu.memory_space<vmem>>, vector<32x128xf32>
    tpu.vector_store %arg5[%c0_8, %c0_9], %14 {strides = array<i32>} : memref<32x128xf32, #tpu.memory_space<vmem>>, vector<32x128xf32>,
    %c0_i32_10 = arith.constant 0 : i32
    %16 = arith.cmpi eq, %arg1, %c0_i32_10 : i32
    %17 = arith.extui %16 : i1 to i32
    %c0_i32_11 = arith.constant 0 : i32
    %18 = arith.cmpi ne, %17, %c0_i32_11 : i32
    scf.if %18 {
      %c0_12 = arith.constant 0 : index
      %c0_13 = arith.constant 0 : index
      %19 = vector.load %arg5[%c0_12, %c0_13] : memref<32x128xf32, #tpu.memory_space<vmem>>, vector<32x128xf32>
      %20 = arith.truncf %19 : vector<32x128xf32> to vector<32x128xbf16>
      %c0_14 = arith.constant 0 : index
      %c0_15 = arith.constant 0 : index
      %21 = vector.load %arg4[%c0_14, %c0_15] : memref<32x128xbf16, #tpu.memory_space<vmem>>, vector<32x128xbf16>
      tpu.vector_store %arg4[%c0_14, %c0_15], %20 {strides = array<i32>} : memref<32x128xbf16, #tpu.memory_space<vmem>>, vector<32x128xbf16>,
    } else {
    }
    return
  }
  func.func @transform_0(%arg0: i32, %arg1: i32) -> (i32, i32) {
    %c0_i32 = arith.constant 0 : i32
    return %arg0, %arg1 : i32, i32
  }
  func.func @transform_1(%arg0: i32, %arg1: i32) -> (i32, i32) {
    %c0_i32 = arith.constant 0 : i32
    %c0_i32_0 = arith.constant 0 : i32
    return %arg1, %c0_i32 : i32, i32
  }
  func.func @transform_2(%arg0: i32, %arg1: i32) -> (i32, i32) {
    %c0_i32 = arith.constant 0 : i32
    %c0_i32_0 = arith.constant 0 : i32
    return %arg0, %c0_i32 : i32, i32
  }
}

module attributes {stable_mosaic.version = 11 : i64} {
  func.func @_bn_stats_kernel(%arg0: i32, %arg1: memref<4x128xbf16, #tpu.memory_space<vmem>>, %arg2: memref<1x128xf32, #tpu.memory_space<vmem>>, %arg3: memref<1x128xf32, #tpu.memory_space<vmem>>, %arg4: memref<1x128xf32, #tpu.memory_space<vmem>>, %arg5: memref<1x128xf32, #tpu.memory_space<vmem>>) attributes {dimension_semantics = [#tpu.dimension_semantics<arbitrary>], iteration_bounds = array<i64: 1>, scalar_prefetch = 0 : i64, scratch_operands = 2 : i64, tpu.core_type = #tpu.core_type<tc>, window_params = [{transform_indices = @transform_0, window_bounds = array<i64: 4, 128>}, {pipeline_mode = #tpu.pipeline_mode<synchronous>, transform_indices = @transform_1, window_bounds = array<i64: 1, 128>}, {pipeline_mode = #tpu.pipeline_mode<synchronous>, transform_indices = @transform_2, window_bounds = array<i64: 1, 128>}]} {
    %c0_i32 = arith.constant 0 : i32
    %0 = arith.cmpi eq, %arg0, %c0_i32 : i32
    %1 = arith.extui %0 : i1 to i32
    %c0_i32_0 = arith.constant 0 : i32
    %2 = arith.cmpi ne, %1, %c0_i32_0 : i32
    scf.if %2 {
      %cst_13 = arith.constant 0.000000e+00 : f32
      %19 = vector.broadcast %cst_13 : f32 to vector<1x128xf32>
      %c0_14 = arith.constant 0 : index
      %c0_15 = arith.constant 0 : index
      %20 = vector.load %arg4[%c0_14, %c0_15] : memref<1x128xf32, #tpu.memory_space<vmem>>, vector<1x128xf32>
      tpu.vector_store %arg4[%c0_14, %c0_15], %19 {strides = array<i32>} : memref<1x128xf32, #tpu.memory_space<vmem>>, vector<1x128xf32>,
      %cst_16 = arith.constant 0.000000e+00 : f32
      %21 = vector.broadcast %cst_16 : f32 to vector<1x128xf32>
      %c0_17 = arith.constant 0 : index
      %c0_18 = arith.constant 0 : index
      %22 = vector.load %arg5[%c0_17, %c0_18] : memref<1x128xf32, #tpu.memory_space<vmem>>, vector<1x128xf32>
      tpu.vector_store %arg5[%c0_17, %c0_18], %21 {strides = array<i32>} : memref<1x128xf32, #tpu.memory_space<vmem>>, vector<1x128xf32>,
    } else {
    }
    %c0 = arith.constant 0 : index
    %c0_1 = arith.constant 0 : index
    %3 = vector.load %arg1[%c0, %c0_1] : memref<4x128xbf16, #tpu.memory_space<vmem>>, vector<4x128xbf16>
    %4 = arith.extf %3 : vector<4x128xbf16> to vector<4x128xf32>
    %c0_2 = arith.constant 0 : index
    %c0_3 = arith.constant 0 : index
    %5 = vector.load %arg4[%c0_2, %c0_3] : memref<1x128xf32, #tpu.memory_space<vmem>>, vector<1x128xf32>
    %cst = arith.constant dense<0.000000e+00> : vector<128xf32>
    %6 = vector.multi_reduction <add>, %4, %cst [0] : vector<4x128xf32> to vector<128xf32>
    %7 = vector.shape_cast %6 : vector<128xf32> to vector<1x128xf32>
    %8 = arith.addf %5, %7 : vector<1x128xf32>
    %c0_4 = arith.constant 0 : index
    %c0_5 = arith.constant 0 : index
    %9 = vector.load %arg4[%c0_4, %c0_5] : memref<1x128xf32, #tpu.memory_space<vmem>>, vector<1x128xf32>
    tpu.vector_store %arg4[%c0_4, %c0_5], %8 {strides = array<i32>} : memref<1x128xf32, #tpu.memory_space<vmem>>, vector<1x128xf32>,
    %c0_6 = arith.constant 0 : index
    %c0_7 = arith.constant 0 : index
    %10 = vector.load %arg5[%c0_6, %c0_7] : memref<1x128xf32, #tpu.memory_space<vmem>>, vector<1x128xf32>
    %11 = arith.mulf %4, %4 : vector<4x128xf32>
    %cst_8 = arith.constant dense<0.000000e+00> : vector<128xf32>
    %12 = vector.multi_reduction <add>, %11, %cst_8 [0] : vector<4x128xf32> to vector<128xf32>
    %13 = vector.shape_cast %12 : vector<128xf32> to vector<1x128xf32>
    %14 = arith.addf %10, %13 : vector<1x128xf32>
    %c0_9 = arith.constant 0 : index
    %c0_10 = arith.constant 0 : index
    %15 = vector.load %arg5[%c0_9, %c0_10] : memref<1x128xf32, #tpu.memory_space<vmem>>, vector<1x128xf32>
    tpu.vector_store %arg5[%c0_9, %c0_10], %14 {strides = array<i32>} : memref<1x128xf32, #tpu.memory_space<vmem>>, vector<1x128xf32>,
    %c0_i32_11 = arith.constant 0 : i32
    %16 = arith.cmpi eq, %arg0, %c0_i32_11 : i32
    %17 = arith.extui %16 : i1 to i32
    %c0_i32_12 = arith.constant 0 : i32
    %18 = arith.cmpi ne, %17, %c0_i32_12 : i32
    scf.if %18 {
      %c0_13 = arith.constant 0 : index
      %c0_14 = arith.constant 0 : index
      %19 = vector.load %arg4[%c0_13, %c0_14] : memref<1x128xf32, #tpu.memory_space<vmem>>, vector<1x128xf32>
      %c0_15 = arith.constant 0 : index
      %c0_16 = arith.constant 0 : index
      %20 = vector.load %arg2[%c0_15, %c0_16] : memref<1x128xf32, #tpu.memory_space<vmem>>, vector<1x128xf32>
      tpu.vector_store %arg2[%c0_15, %c0_16], %19 {strides = array<i32>} : memref<1x128xf32, #tpu.memory_space<vmem>>, vector<1x128xf32>,
      %c0_17 = arith.constant 0 : index
      %c0_18 = arith.constant 0 : index
      %21 = vector.load %arg5[%c0_17, %c0_18] : memref<1x128xf32, #tpu.memory_space<vmem>>, vector<1x128xf32>
      %c0_19 = arith.constant 0 : index
      %c0_20 = arith.constant 0 : index
      %22 = vector.load %arg3[%c0_19, %c0_20] : memref<1x128xf32, #tpu.memory_space<vmem>>, vector<1x128xf32>
      tpu.vector_store %arg3[%c0_19, %c0_20], %21 {strides = array<i32>} : memref<1x128xf32, #tpu.memory_space<vmem>>, vector<1x128xf32>,
    } else {
    }
    return
  }
  func.func @transform_0(%arg0: i32) -> (i32, i32) {
    %c0_i32 = arith.constant 0 : i32
    %c0_i32_0 = arith.constant 0 : i32
    return %arg0, %c0_i32 : i32, i32
  }
  func.func @transform_1(%arg0: i32) -> (i32, i32) {
    %c0_i32 = arith.constant 0 : i32
    %c0_i32_0 = arith.constant 0 : i32
    %c0_i32_1 = arith.constant 0 : i32
    return %c0_i32, %c0_i32_0 : i32, i32
  }
  func.func @transform_2(%arg0: i32) -> (i32, i32) {
    %c0_i32 = arith.constant 0 : i32
    %c0_i32_0 = arith.constant 0 : i32
    %c0_i32_1 = arith.constant 0 : i32
    return %c0_i32, %c0_i32_0 : i32, i32
  }
}

module attributes {stable_mosaic.version = 11 : i64} {
  func.func @_gemm_kernel(%arg0: i32, %arg1: i32, %arg2: memref<16x256xbf16, #tpu.memory_space<vmem>>, %arg3: memref<256x128xbf16, #tpu.memory_space<vmem>>, %arg4: memref<1x256xf32, #tpu.memory_space<vmem>>, %arg5: memref<1x256xf32, #tpu.memory_space<vmem>>, %arg6: memref<16x128xbf16, #tpu.memory_space<vmem>>, %arg7: memref<16x128xf32, #tpu.memory_space<vmem>>) attributes {dimension_semantics = [#tpu.dimension_semantics<parallel>, #tpu.dimension_semantics<arbitrary>], iteration_bounds = array<i64: 1, 1>, scalar_prefetch = 0 : i64, scratch_operands = 1 : i64, tpu.core_type = #tpu.core_type<tc>, window_params = [{transform_indices = @transform_0, window_bounds = array<i64: 16, 256>}, {transform_indices = @transform_1, window_bounds = array<i64: 256, 128>}, {transform_indices = @transform_2, window_bounds = array<i64: 1, 256>}, {transform_indices = @transform_3, window_bounds = array<i64: 1, 256>}, {transform_indices = @transform_4, window_bounds = array<i64: 16, 128>}]} {
    %c0_i32 = arith.constant 0 : i32
    %0 = arith.cmpi eq, %arg1, %c0_i32 : i32
    %1 = arith.extui %0 : i1 to i32
    %c0_i32_0 = arith.constant 0 : i32
    %2 = arith.cmpi ne, %1, %c0_i32_0 : i32
    scf.if %2 {
      %cst_16 = arith.constant 0.000000e+00 : f32
      %25 = vector.broadcast %cst_16 : f32 to vector<16x128xf32>
      %c0_17 = arith.constant 0 : index
      %c0_18 = arith.constant 0 : index
      %26 = vector.load %arg7[%c0_17, %c0_18] : memref<16x128xf32, #tpu.memory_space<vmem>>, vector<16x128xf32>
      tpu.vector_store %arg7[%c0_17, %c0_18], %25 {strides = array<i32>} : memref<16x128xf32, #tpu.memory_space<vmem>>, vector<16x128xf32>,
    } else {
    }
    %c0 = arith.constant 0 : index
    %c0_1 = arith.constant 0 : index
    %3 = vector.load %arg2[%c0, %c0_1] : memref<16x256xbf16, #tpu.memory_space<vmem>>, vector<16x256xbf16>
    %4 = arith.extf %3 : vector<16x256xbf16> to vector<16x256xf32>
    %c0_2 = arith.constant 0 : index
    %c0_3 = arith.constant 0 : index
    %5 = vector.load %arg4[%c0_2, %c0_3] : memref<1x256xf32, #tpu.memory_space<vmem>>, vector<1x256xf32>
    %6 = vector.broadcast %5 : vector<1x256xf32> to vector<16x256xf32>
    %7 = arith.mulf %4, %6 : vector<16x256xf32>
    %c0_4 = arith.constant 0 : index
    %c0_5 = arith.constant 0 : index
    %8 = vector.load %arg5[%c0_4, %c0_5] : memref<1x256xf32, #tpu.memory_space<vmem>>, vector<1x256xf32>
    %9 = vector.broadcast %8 : vector<1x256xf32> to vector<16x256xf32>
    %10 = arith.addf %7, %9 : vector<16x256xf32>
    %cst = arith.constant 0.000000e+00 : f32
    %11 = vector.broadcast %cst : f32 to vector<16x256xf32>
    %12 = arith.cmpf oge, %10, %11 : vector<16x256xf32>
    %cst_6 = arith.constant 2.000000e-01 : f32
    %13 = vector.broadcast %cst_6 : f32 to vector<16x256xf32>
    %14 = arith.mulf %10, %13 : vector<16x256xf32>
    %15 = arith.select %12, %10, %14 : vector<16x256xi1>, vector<16x256xf32>
    %16 = arith.truncf %15 : vector<16x256xf32> to vector<16x256xbf16>
    %c0_7 = arith.constant 0 : index
    %c0_8 = arith.constant 0 : index
    %17 = vector.load %arg7[%c0_7, %c0_8] : memref<16x128xf32, #tpu.memory_space<vmem>>, vector<16x128xf32>
    %c0_9 = arith.constant 0 : index
    %c0_10 = arith.constant 0 : index
    %18 = vector.load %arg3[%c0_9, %c0_10] : memref<256x128xbf16, #tpu.memory_space<vmem>>, vector<256x128xbf16>
    %cst_11 = arith.constant dense<0.000000e+00> : vector<16x128xf32>
    %19 = tpu.matmul %16, %18, %cst_11 {dimension_numbers = #tpu.dot_dimension_numbers<[1], [0], [0], [1], [0, 0, 1, 1], [], []>} : vector<16x256xbf16>, vector<256x128xbf16>, vector<16x128xf32> -> vector<16x128xf32>
    %20 = arith.addf %17, %19 : vector<16x128xf32>
    %c0_12 = arith.constant 0 : index
    %c0_13 = arith.constant 0 : index
    %21 = vector.load %arg7[%c0_12, %c0_13] : memref<16x128xf32, #tpu.memory_space<vmem>>, vector<16x128xf32>
    tpu.vector_store %arg7[%c0_12, %c0_13], %20 {strides = array<i32>} : memref<16x128xf32, #tpu.memory_space<vmem>>, vector<16x128xf32>,
    %c0_i32_14 = arith.constant 0 : i32
    %22 = arith.cmpi eq, %arg1, %c0_i32_14 : i32
    %23 = arith.extui %22 : i1 to i32
    %c0_i32_15 = arith.constant 0 : i32
    %24 = arith.cmpi ne, %23, %c0_i32_15 : i32
    scf.if %24 {
      %c0_16 = arith.constant 0 : index
      %c0_17 = arith.constant 0 : index
      %25 = vector.load %arg7[%c0_16, %c0_17] : memref<16x128xf32, #tpu.memory_space<vmem>>, vector<16x128xf32>
      %26 = arith.truncf %25 : vector<16x128xf32> to vector<16x128xbf16>
      %c0_18 = arith.constant 0 : index
      %c0_19 = arith.constant 0 : index
      %27 = vector.load %arg6[%c0_18, %c0_19] : memref<16x128xbf16, #tpu.memory_space<vmem>>, vector<16x128xbf16>
      tpu.vector_store %arg6[%c0_18, %c0_19], %26 {strides = array<i32>} : memref<16x128xbf16, #tpu.memory_space<vmem>>, vector<16x128xbf16>,
    } else {
    }
    return
  }
  func.func @transform_0(%arg0: i32, %arg1: i32) -> (i32, i32) {
    %c0_i32 = arith.constant 0 : i32
    return %arg0, %arg1 : i32, i32
  }
  func.func @transform_1(%arg0: i32, %arg1: i32) -> (i32, i32) {
    %c0_i32 = arith.constant 0 : i32
    %c0_i32_0 = arith.constant 0 : i32
    return %arg1, %c0_i32 : i32, i32
  }
  func.func @transform_2(%arg0: i32, %arg1: i32) -> (i32, i32) {
    %c0_i32 = arith.constant 0 : i32
    %c0_i32_0 = arith.constant 0 : i32
    return %c0_i32, %arg1 : i32, i32
  }
  func.func @transform_3(%arg0: i32, %arg1: i32) -> (i32, i32) {
    %c0_i32 = arith.constant 0 : i32
    %c0_i32_0 = arith.constant 0 : i32
    return %c0_i32, %arg1 : i32, i32
  }
  func.func @transform_4(%arg0: i32, %arg1: i32) -> (i32, i32) {
    %c0_i32 = arith.constant 0 : i32
    %c0_i32_0 = arith.constant 0 : i32
    return %arg0, %c0_i32 : i32, i32
  }
}

module attributes {stable_mosaic.version = 11 : i64} {
  func.func @_gemm_kernel(%arg0: i32, %arg1: i32, %arg2: memref<32x128xbf16, #tpu.memory_space<vmem>>, %arg3: memref<128x128xbf16, #tpu.memory_space<vmem>>, %arg4: memref<32x128xbf16, #tpu.memory_space<vmem>>, %arg5: memref<32x128xf32, #tpu.memory_space<vmem>>) attributes {dimension_semantics = [#tpu.dimension_semantics<parallel>, #tpu.dimension_semantics<arbitrary>], iteration_bounds = array<i64: 1, 1>, scalar_prefetch = 0 : i64, scratch_operands = 1 : i64, tpu.core_type = #tpu.core_type<tc>, window_params = [{transform_indices = @transform_0, window_bounds = array<i64: 32, 128>}, {transform_indices = @transform_1, window_bounds = array<i64: 128, 128>}, {transform_indices = @transform_2, window_bounds = array<i64: 32, 128>}]} {
    %c0_i32 = arith.constant 0 : i32
    %0 = arith.cmpi eq, %arg1, %c0_i32 : i32
    %1 = arith.extui %0 : i1 to i32
    %c0_i32_0 = arith.constant 0 : i32
    %2 = arith.cmpi ne, %1, %c0_i32_0 : i32
    scf.if %2 {
      %cst_11 = arith.constant 0.000000e+00 : f32
      %16 = vector.broadcast %cst_11 : f32 to vector<32x128xf32>
      %c0_12 = arith.constant 0 : index
      %c0_13 = arith.constant 0 : index
      %17 = vector.load %arg5[%c0_12, %c0_13] : memref<32x128xf32, #tpu.memory_space<vmem>>, vector<32x128xf32>
      tpu.vector_store %arg5[%c0_12, %c0_13], %16 {strides = array<i32>} : memref<32x128xf32, #tpu.memory_space<vmem>>, vector<32x128xf32>,
    } else {
    }
    %c0 = arith.constant 0 : index
    %c0_1 = arith.constant 0 : index
    %3 = vector.load %arg2[%c0, %c0_1] : memref<32x128xbf16, #tpu.memory_space<vmem>>, vector<32x128xbf16>
    %4 = arith.extf %3 : vector<32x128xbf16> to vector<32x128xf32>
    %cst = arith.constant 0.000000e+00 : f32
    %5 = vector.broadcast %cst : f32 to vector<32x128xf32>
    %6 = arith.maximumf %4, %5 : vector<32x128xf32>
    %7 = arith.truncf %6 : vector<32x128xf32> to vector<32x128xbf16>
    %c0_2 = arith.constant 0 : index
    %c0_3 = arith.constant 0 : index
    %8 = vector.load %arg5[%c0_2, %c0_3] : memref<32x128xf32, #tpu.memory_space<vmem>>, vector<32x128xf32>
    %c0_4 = arith.constant 0 : index
    %c0_5 = arith.constant 0 : index
    %9 = vector.load %arg3[%c0_4, %c0_5] : memref<128x128xbf16, #tpu.memory_space<vmem>>, vector<128x128xbf16>
    %cst_6 = arith.constant dense<0.000000e+00> : vector<32x128xf32>
    %10 = tpu.matmul %7, %9, %cst_6 {dimension_numbers = #tpu.dot_dimension_numbers<[1], [0], [0], [1], [0, 0, 1, 1], [], []>} : vector<32x128xbf16>, vector<128x128xbf16>, vector<32x128xf32> -> vector<32x128xf32>
    %11 = arith.addf %8, %10 : vector<32x128xf32>
    %c0_7 = arith.constant 0 : index
    %c0_8 = arith.constant 0 : index
    %12 = vector.load %arg5[%c0_7, %c0_8] : memref<32x128xf32, #tpu.memory_space<vmem>>, vector<32x128xf32>
    tpu.vector_store %arg5[%c0_7, %c0_8], %11 {strides = array<i32>} : memref<32x128xf32, #tpu.memory_space<vmem>>, vector<32x128xf32>,
    %c0_i32_9 = arith.constant 0 : i32
    %13 = arith.cmpi eq, %arg1, %c0_i32_9 : i32
    %14 = arith.extui %13 : i1 to i32
    %c0_i32_10 = arith.constant 0 : i32
    %15 = arith.cmpi ne, %14, %c0_i32_10 : i32
    scf.if %15 {
      %c0_11 = arith.constant 0 : index
      %c0_12 = arith.constant 0 : index
      %16 = vector.load %arg5[%c0_11, %c0_12] : memref<32x128xf32, #tpu.memory_space<vmem>>, vector<32x128xf32>
      %17 = arith.truncf %16 : vector<32x128xf32> to vector<32x128xbf16>
      %c0_13 = arith.constant 0 : index
      %c0_14 = arith.constant 0 : index
      %18 = vector.load %arg4[%c0_13, %c0_14] : memref<32x128xbf16, #tpu.memory_space<vmem>>, vector<32x128xbf16>
      tpu.vector_store %arg4[%c0_13, %c0_14], %17 {strides = array<i32>} : memref<32x128xbf16, #tpu.memory_space<vmem>>, vector<32x128xbf16>,
    } else {
    }
    return
  }
  func.func @transform_0(%arg0: i32, %arg1: i32) -> (i32, i32) {
    %c0_i32 = arith.constant 0 : i32
    return %arg0, %arg1 : i32, i32
  }
  func.func @transform_1(%arg0: i32, %arg1: i32) -> (i32, i32) {
    %c0_i32 = arith.constant 0 : i32
    %c0_i32_0 = arith.constant 0 : i32
    return %arg1, %c0_i32 : i32, i32
  }
  func.func @transform_2(%arg0: i32, %arg1: i32) -> (i32, i32) {
    %c0_i32 = arith.constant 0 : i32
    %c0_i32_0 = arith.constant 0 : i32
    return %arg0, %c0_i32 : i32, i32
  }
}

module attributes {stable_mosaic.version = 11 : i64} {
  func.func @_gemm_kernel(%arg0: i32, %arg1: i32, %arg2: memref<64x128xbf16, #tpu.memory_space<vmem>>, %arg3: memref<128x128xbf16, #tpu.memory_space<vmem>>, %arg4: memref<1x128xf32, #tpu.memory_space<vmem>>, %arg5: memref<1x128xf32, #tpu.memory_space<vmem>>, %arg6: memref<64x128xbf16, #tpu.memory_space<vmem>>, %arg7: memref<64x128xf32, #tpu.memory_space<vmem>>) attributes {dimension_semantics = [#tpu.dimension_semantics<parallel>, #tpu.dimension_semantics<arbitrary>], iteration_bounds = array<i64: 1, 1>, scalar_prefetch = 0 : i64, scratch_operands = 1 : i64, tpu.core_type = #tpu.core_type<tc>, window_params = [{transform_indices = @transform_0, window_bounds = array<i64: 64, 128>}, {transform_indices = @transform_1, window_bounds = array<i64: 128, 128>}, {transform_indices = @transform_2, window_bounds = array<i64: 1, 128>}, {transform_indices = @transform_3, window_bounds = array<i64: 1, 128>}, {transform_indices = @transform_4, window_bounds = array<i64: 64, 128>}]} {
    %c0_i32 = arith.constant 0 : i32
    %0 = arith.cmpi eq, %arg1, %c0_i32 : i32
    %1 = arith.extui %0 : i1 to i32
    %c0_i32_0 = arith.constant 0 : i32
    %2 = arith.cmpi ne, %1, %c0_i32_0 : i32
    scf.if %2 {
      %cst_15 = arith.constant 0.000000e+00 : f32
      %22 = vector.broadcast %cst_15 : f32 to vector<64x128xf32>
      %c0_16 = arith.constant 0 : index
      %c0_17 = arith.constant 0 : index
      %23 = vector.load %arg7[%c0_16, %c0_17] : memref<64x128xf32, #tpu.memory_space<vmem>>, vector<64x128xf32>
      tpu.vector_store %arg7[%c0_16, %c0_17], %22 {strides = array<i32>} : memref<64x128xf32, #tpu.memory_space<vmem>>, vector<64x128xf32>,
    } else {
    }
    %c0 = arith.constant 0 : index
    %c0_1 = arith.constant 0 : index
    %3 = vector.load %arg2[%c0, %c0_1] : memref<64x128xbf16, #tpu.memory_space<vmem>>, vector<64x128xbf16>
    %4 = arith.extf %3 : vector<64x128xbf16> to vector<64x128xf32>
    %c0_2 = arith.constant 0 : index
    %c0_3 = arith.constant 0 : index
    %5 = vector.load %arg4[%c0_2, %c0_3] : memref<1x128xf32, #tpu.memory_space<vmem>>, vector<1x128xf32>
    %6 = vector.broadcast %5 : vector<1x128xf32> to vector<64x128xf32>
    %7 = arith.mulf %4, %6 : vector<64x128xf32>
    %c0_4 = arith.constant 0 : index
    %c0_5 = arith.constant 0 : index
    %8 = vector.load %arg5[%c0_4, %c0_5] : memref<1x128xf32, #tpu.memory_space<vmem>>, vector<1x128xf32>
    %9 = vector.broadcast %8 : vector<1x128xf32> to vector<64x128xf32>
    %10 = arith.addf %7, %9 : vector<64x128xf32>
    %cst = arith.constant 0.000000e+00 : f32
    %11 = vector.broadcast %cst : f32 to vector<64x128xf32>
    %12 = arith.maximumf %10, %11 : vector<64x128xf32>
    %13 = arith.truncf %12 : vector<64x128xf32> to vector<64x128xbf16>
    %c0_6 = arith.constant 0 : index
    %c0_7 = arith.constant 0 : index
    %14 = vector.load %arg7[%c0_6, %c0_7] : memref<64x128xf32, #tpu.memory_space<vmem>>, vector<64x128xf32>
    %c0_8 = arith.constant 0 : index
    %c0_9 = arith.constant 0 : index
    %15 = vector.load %arg3[%c0_8, %c0_9] : memref<128x128xbf16, #tpu.memory_space<vmem>>, vector<128x128xbf16>
    %cst_10 = arith.constant dense<0.000000e+00> : vector<64x128xf32>
    %16 = tpu.matmul %13, %15, %cst_10 {dimension_numbers = #tpu.dot_dimension_numbers<[1], [0], [0], [1], [0, 0, 1, 1], [], []>} : vector<64x128xbf16>, vector<128x128xbf16>, vector<64x128xf32> -> vector<64x128xf32>
    %17 = arith.addf %14, %16 : vector<64x128xf32>
    %c0_11 = arith.constant 0 : index
    %c0_12 = arith.constant 0 : index
    %18 = vector.load %arg7[%c0_11, %c0_12] : memref<64x128xf32, #tpu.memory_space<vmem>>, vector<64x128xf32>
    tpu.vector_store %arg7[%c0_11, %c0_12], %17 {strides = array<i32>} : memref<64x128xf32, #tpu.memory_space<vmem>>, vector<64x128xf32>,
    %c0_i32_13 = arith.constant 0 : i32
    %19 = arith.cmpi eq, %arg1, %c0_i32_13 : i32
    %20 = arith.extui %19 : i1 to i32
    %c0_i32_14 = arith.constant 0 : i32
    %21 = arith.cmpi ne, %20, %c0_i32_14 : i32
    scf.if %21 {
      %c0_15 = arith.constant 0 : index
      %c0_16 = arith.constant 0 : index
      %22 = vector.load %arg7[%c0_15, %c0_16] : memref<64x128xf32, #tpu.memory_space<vmem>>, vector<64x128xf32>
      %23 = arith.truncf %22 : vector<64x128xf32> to vector<64x128xbf16>
      %c0_17 = arith.constant 0 : index
      %c0_18 = arith.constant 0 : index
      %24 = vector.load %arg6[%c0_17, %c0_18] : memref<64x128xbf16, #tpu.memory_space<vmem>>, vector<64x128xbf16>
      tpu.vector_store %arg6[%c0_17, %c0_18], %23 {strides = array<i32>} : memref<64x128xbf16, #tpu.memory_space<vmem>>, vector<64x128xbf16>,
    } else {
    }
    return
  }
  func.func @transform_0(%arg0: i32, %arg1: i32) -> (i32, i32) {
    %c0_i32 = arith.constant 0 : i32
    return %arg0, %arg1 : i32, i32
  }
  func.func @transform_1(%arg0: i32, %arg1: i32) -> (i32, i32) {
    %c0_i32 = arith.constant 0 : i32
    %c0_i32_0 = arith.constant 0 : i32
    return %arg1, %c0_i32 : i32, i32
  }
  func.func @transform_2(%arg0: i32, %arg1: i32) -> (i32, i32) {
    %c0_i32 = arith.constant 0 : i32
    %c0_i32_0 = arith.constant 0 : i32
    return %c0_i32, %arg1 : i32, i32
  }
  func.func @transform_3(%arg0: i32, %arg1: i32) -> (i32, i32) {
    %c0_i32 = arith.constant 0 : i32
    %c0_i32_0 = arith.constant 0 : i32
    return %c0_i32, %arg1 : i32, i32
  }
  func.func @transform_4(%arg0: i32, %arg1: i32) -> (i32, i32) {
    %c0_i32 = arith.constant 0 : i32
    %c0_i32_0 = arith.constant 0 : i32
    return %arg0, %c0_i32 : i32, i32
  }
}

module attributes {stable_mosaic.version = 11 : i64} {
  func.func @_bn_stats_kernel(%arg0: i32, %arg1: memref<8x128xbf16, #tpu.memory_space<vmem>>, %arg2: memref<1x128xf32, #tpu.memory_space<vmem>>, %arg3: memref<1x128xf32, #tpu.memory_space<vmem>>, %arg4: memref<1x128xf32, #tpu.memory_space<vmem>>, %arg5: memref<1x128xf32, #tpu.memory_space<vmem>>) attributes {dimension_semantics = [#tpu.dimension_semantics<arbitrary>], iteration_bounds = array<i64: 1>, scalar_prefetch = 0 : i64, scratch_operands = 2 : i64, tpu.core_type = #tpu.core_type<tc>, window_params = [{transform_indices = @transform_0, window_bounds = array<i64: 8, 128>}, {pipeline_mode = #tpu.pipeline_mode<synchronous>, transform_indices = @transform_1, window_bounds = array<i64: 1, 128>}, {pipeline_mode = #tpu.pipeline_mode<synchronous>, transform_indices = @transform_2, window_bounds = array<i64: 1, 128>}]} {
    %c0_i32 = arith.constant 0 : i32
    %0 = arith.cmpi eq, %arg0, %c0_i32 : i32
    %1 = arith.extui %0 : i1 to i32
    %c0_i32_0 = arith.constant 0 : i32
    %2 = arith.cmpi ne, %1, %c0_i32_0 : i32
    scf.if %2 {
      %cst_13 = arith.constant 0.000000e+00 : f32
      %19 = vector.broadcast %cst_13 : f32 to vector<1x128xf32>
      %c0_14 = arith.constant 0 : index
      %c0_15 = arith.constant 0 : index
      %20 = vector.load %arg4[%c0_14, %c0_15] : memref<1x128xf32, #tpu.memory_space<vmem>>, vector<1x128xf32>
      tpu.vector_store %arg4[%c0_14, %c0_15], %19 {strides = array<i32>} : memref<1x128xf32, #tpu.memory_space<vmem>>, vector<1x128xf32>,
      %cst_16 = arith.constant 0.000000e+00 : f32
      %21 = vector.broadcast %cst_16 : f32 to vector<1x128xf32>
      %c0_17 = arith.constant 0 : index
      %c0_18 = arith.constant 0 : index
      %22 = vector.load %arg5[%c0_17, %c0_18] : memref<1x128xf32, #tpu.memory_space<vmem>>, vector<1x128xf32>
      tpu.vector_store %arg5[%c0_17, %c0_18], %21 {strides = array<i32>} : memref<1x128xf32, #tpu.memory_space<vmem>>, vector<1x128xf32>,
    } else {
    }
    %c0 = arith.constant 0 : index
    %c0_1 = arith.constant 0 : index
    %3 = vector.load %arg1[%c0, %c0_1] : memref<8x128xbf16, #tpu.memory_space<vmem>>, vector<8x128xbf16>
    %4 = arith.extf %3 : vector<8x128xbf16> to vector<8x128xf32>
    %c0_2 = arith.constant 0 : index
    %c0_3 = arith.constant 0 : index
    %5 = vector.load %arg4[%c0_2, %c0_3] : memref<1x128xf32, #tpu.memory_space<vmem>>, vector<1x128xf32>
    %cst = arith.constant dense<0.000000e+00> : vector<128xf32>
    %6 = vector.multi_reduction <add>, %4, %cst [0] : vector<8x128xf32> to vector<128xf32>
    %7 = vector.shape_cast %6 : vector<128xf32> to vector<1x128xf32>
    %8 = arith.addf %5, %7 : vector<1x128xf32>
    %c0_4 = arith.constant 0 : index
    %c0_5 = arith.constant 0 : index
    %9 = vector.load %arg4[%c0_4, %c0_5] : memref<1x128xf32, #tpu.memory_space<vmem>>, vector<1x128xf32>
    tpu.vector_store %arg4[%c0_4, %c0_5], %8 {strides = array<i32>} : memref<1x128xf32, #tpu.memory_space<vmem>>, vector<1x128xf32>,
    %c0_6 = arith.constant 0 : index
    %c0_7 = arith.constant 0 : index
    %10 = vector.load %arg5[%c0_6, %c0_7] : memref<1x128xf32, #tpu.memory_space<vmem>>, vector<1x128xf32>
    %11 = arith.mulf %4, %4 : vector<8x128xf32>
    %cst_8 = arith.constant dense<0.000000e+00> : vector<128xf32>
    %12 = vector.multi_reduction <add>, %11, %cst_8 [0] : vector<8x128xf32> to vector<128xf32>
    %13 = vector.shape_cast %12 : vector<128xf32> to vector<1x128xf32>
    %14 = arith.addf %10, %13 : vector<1x128xf32>
    %c0_9 = arith.constant 0 : index
    %c0_10 = arith.constant 0 : index
    %15 = vector.load %arg5[%c0_9, %c0_10] : memref<1x128xf32, #tpu.memory_space<vmem>>, vector<1x128xf32>
    tpu.vector_store %arg5[%c0_9, %c0_10], %14 {strides = array<i32>} : memref<1x128xf32, #tpu.memory_space<vmem>>, vector<1x128xf32>,
    %c0_i32_11 = arith.constant 0 : i32
    %16 = arith.cmpi eq, %arg0, %c0_i32_11 : i32
    %17 = arith.extui %16 : i1 to i32
    %c0_i32_12 = arith.constant 0 : i32
    %18 = arith.cmpi ne, %17, %c0_i32_12 : i32
    scf.if %18 {
      %c0_13 = arith.constant 0 : index
      %c0_14 = arith.constant 0 : index
      %19 = vector.load %arg4[%c0_13, %c0_14] : memref<1x128xf32, #tpu.memory_space<vmem>>, vector<1x128xf32>
      %c0_15 = arith.constant 0 : index
      %c0_16 = arith.constant 0 : index
      %20 = vector.load %arg2[%c0_15, %c0_16] : memref<1x128xf32, #tpu.memory_space<vmem>>, vector<1x128xf32>
      tpu.vector_store %arg2[%c0_15, %c0_16], %19 {strides = array<i32>} : memref<1x128xf32, #tpu.memory_space<vmem>>, vector<1x128xf32>,
      %c0_17 = arith.constant 0 : index
      %c0_18 = arith.constant 0 : index
      %21 = vector.load %arg5[%c0_17, %c0_18] : memref<1x128xf32, #tpu.memory_space<vmem>>, vector<1x128xf32>
      %c0_19 = arith.constant 0 : index
      %c0_20 = arith.constant 0 : index
      %22 = vector.load %arg3[%c0_19, %c0_20] : memref<1x128xf32, #tpu.memory_space<vmem>>, vector<1x128xf32>
      tpu.vector_store %arg3[%c0_19, %c0_20], %21 {strides = array<i32>} : memref<1x128xf32, #tpu.memory_space<vmem>>, vector<1x128xf32>,
    } else {
    }
    return
  }
  func.func @transform_0(%arg0: i32) -> (i32, i32) {
    %c0_i32 = arith.constant 0 : i32
    %c0_i32_0 = arith.constant 0 : i32
    return %arg0, %c0_i32 : i32, i32
  }
  func.func @transform_1(%arg0: i32) -> (i32, i32) {
    %c0_i32 = arith.constant 0 : i32
    %c0_i32_0 = arith.constant 0 : i32
    %c0_i32_1 = arith.constant 0 : i32
    return %c0_i32, %c0_i32_0 : i32, i32
  }
  func.func @transform_2(%arg0: i32) -> (i32, i32) {
    %c0_i32 = arith.constant 0 : i32
    %c0_i32_0 = arith.constant 0 : i32
    %c0_i32_1 = arith.constant 0 : i32
    return %c0_i32, %c0_i32_0 : i32, i32
  }
}

module attributes {stable_mosaic.version = 11 : i64} {
  func.func @_gemm_kernel(%arg0: i32, %arg1: i32, %arg2: memref<16x64xbf16, #tpu.memory_space<vmem>>, %arg3: memref<64x128xbf16, #tpu.memory_space<vmem>>, %arg4: memref<1x64xf32, #tpu.memory_space<vmem>>, %arg5: memref<1x64xf32, #tpu.memory_space<vmem>>, %arg6: memref<1x128xf32, #tpu.memory_space<vmem>>, %arg7: memref<16x128xf32, #tpu.memory_space<vmem>>, %arg8: memref<16x128xf32, #tpu.memory_space<vmem>>) attributes {dimension_semantics = [#tpu.dimension_semantics<parallel>, #tpu.dimension_semantics<arbitrary>], iteration_bounds = array<i64: 11, 1>, scalar_prefetch = 0 : i64, scratch_operands = 1 : i64, tpu.core_type = #tpu.core_type<tc>, window_params = [{transform_indices = @transform_0, window_bounds = array<i64: 16, 64>}, {transform_indices = @transform_1, window_bounds = array<i64: 64, 128>}, {transform_indices = @transform_2, window_bounds = array<i64: 1, 64>}, {transform_indices = @transform_3, window_bounds = array<i64: 1, 64>}, {pipeline_mode = #tpu.pipeline_mode<synchronous>, transform_indices = @transform_4, window_bounds = array<i64: 1, 128>}, {transform_indices = @transform_5, window_bounds = array<i64: 16, 128>}]} {
    %c0_i32 = arith.constant 0 : i32
    %0 = arith.cmpi eq, %arg1, %c0_i32 : i32
    %1 = arith.extui %0 : i1 to i32
    %c0_i32_0 = arith.constant 0 : i32
    %2 = arith.cmpi ne, %1, %c0_i32_0 : i32
    scf.if %2 {
      %cst_15 = arith.constant 0.000000e+00 : f32
      %22 = vector.broadcast %cst_15 : f32 to vector<16x128xf32>
      %c0_16 = arith.constant 0 : index
      %c0_17 = arith.constant 0 : index
      %23 = vector.load %arg8[%c0_16, %c0_17] : memref<16x128xf32, #tpu.memory_space<vmem>>, vector<16x128xf32>
      tpu.vector_store %arg8[%c0_16, %c0_17], %22 {strides = array<i32>} : memref<16x128xf32, #tpu.memory_space<vmem>>, vector<16x128xf32>,
    } else {
    }
    %c0 = arith.constant 0 : index
    %c0_1 = arith.constant 0 : index
    %3 = vector.load %arg2[%c0, %c0_1] : memref<16x64xbf16, #tpu.memory_space<vmem>>, vector<16x64xbf16>
    %4 = arith.extf %3 : vector<16x64xbf16> to vector<16x64xf32>
    %c0_2 = arith.constant 0 : index
    %c0_3 = arith.constant 0 : index
    %5 = vector.load %arg4[%c0_2, %c0_3] : memref<1x64xf32, #tpu.memory_space<vmem>>, vector<1x64xf32>
    %6 = vector.broadcast %5 : vector<1x64xf32> to vector<16x64xf32>
    %7 = arith.mulf %4, %6 : vector<16x64xf32>
    %c0_4 = arith.constant 0 : index
    %c0_5 = arith.constant 0 : index
    %8 = vector.load %arg5[%c0_4, %c0_5] : memref<1x64xf32, #tpu.memory_space<vmem>>, vector<1x64xf32>
    %9 = vector.broadcast %8 : vector<1x64xf32> to vector<16x64xf32>
    %10 = arith.addf %7, %9 : vector<16x64xf32>
    %cst = arith.constant 0.000000e+00 : f32
    %11 = vector.broadcast %cst : f32 to vector<16x64xf32>
    %12 = arith.maximumf %10, %11 : vector<16x64xf32>
    %13 = arith.truncf %12 : vector<16x64xf32> to vector<16x64xbf16>
    %c0_6 = arith.constant 0 : index
    %c0_7 = arith.constant 0 : index
    %14 = vector.load %arg8[%c0_6, %c0_7] : memref<16x128xf32, #tpu.memory_space<vmem>>, vector<16x128xf32>
    %c0_8 = arith.constant 0 : index
    %c0_9 = arith.constant 0 : index
    %15 = vector.load %arg3[%c0_8, %c0_9] : memref<64x128xbf16, #tpu.memory_space<vmem>>, vector<64x128xbf16>
    %cst_10 = arith.constant dense<0.000000e+00> : vector<16x128xf32>
    %16 = tpu.matmul %13, %15, %cst_10 {dimension_numbers = #tpu.dot_dimension_numbers<[1], [0], [0], [1], [0, 0, 1, 1], [], []>} : vector<16x64xbf16>, vector<64x128xbf16>, vector<16x128xf32> -> vector<16x128xf32>
    %17 = arith.addf %14, %16 : vector<16x128xf32>
    %c0_11 = arith.constant 0 : index
    %c0_12 = arith.constant 0 : index
    %18 = vector.load %arg8[%c0_11, %c0_12] : memref<16x128xf32, #tpu.memory_space<vmem>>, vector<16x128xf32>
    tpu.vector_store %arg8[%c0_11, %c0_12], %17 {strides = array<i32>} : memref<16x128xf32, #tpu.memory_space<vmem>>, vector<16x128xf32>,
    %c0_i32_13 = arith.constant 0 : i32
    %19 = arith.cmpi eq, %arg1, %c0_i32_13 : i32
    %20 = arith.extui %19 : i1 to i32
    %c0_i32_14 = arith.constant 0 : i32
    %21 = arith.cmpi ne, %20, %c0_i32_14 : i32
    scf.if %21 {
      %c0_15 = arith.constant 0 : index
      %c0_16 = arith.constant 0 : index
      %22 = vector.load %arg8[%c0_15, %c0_16] : memref<16x128xf32, #tpu.memory_space<vmem>>, vector<16x128xf32>
      %c0_17 = arith.constant 0 : index
      %c0_18 = arith.constant 0 : index
      %23 = vector.load %arg6[%c0_17, %c0_18] : memref<1x128xf32, #tpu.memory_space<vmem>>, vector<1x128xf32>
      %24 = vector.broadcast %23 : vector<1x128xf32> to vector<16x128xf32>
      %25 = arith.addf %22, %24 : vector<16x128xf32>
      %26 = math.tanh %25 : vector<16x128xf32>
      %c0_19 = arith.constant 0 : index
      %c0_20 = arith.constant 0 : index
      %27 = vector.load %arg7[%c0_19, %c0_20] : memref<16x128xf32, #tpu.memory_space<vmem>>, vector<16x128xf32>
      tpu.vector_store %arg7[%c0_19, %c0_20], %26 {strides = array<i32>} : memref<16x128xf32, #tpu.memory_space<vmem>>, vector<16x128xf32>,
    } else {
    }
    return
  }
  func.func @transform_0(%arg0: i32, %arg1: i32) -> (i32, i32) {
    %c0_i32 = arith.constant 0 : i32
    return %arg0, %arg1 : i32, i32
  }
  func.func @transform_1(%arg0: i32, %arg1: i32) -> (i32, i32) {
    %c0_i32 = arith.constant 0 : i32
    %c0_i32_0 = arith.constant 0 : i32
    return %arg1, %c0_i32 : i32, i32
  }
  func.func @transform_2(%arg0: i32, %arg1: i32) -> (i32, i32) {
    %c0_i32 = arith.constant 0 : i32
    %c0_i32_0 = arith.constant 0 : i32
    return %c0_i32, %arg1 : i32, i32
  }
  func.func @transform_3(%arg0: i32, %arg1: i32) -> (i32, i32) {
    %c0_i32 = arith.constant 0 : i32
    %c0_i32_0 = arith.constant 0 : i32
    return %c0_i32, %arg1 : i32, i32
  }
  func.func @transform_4(%arg0: i32, %arg1: i32) -> (i32, i32) {
    %c0_i32 = arith.constant 0 : i32
    %c0_i32_0 = arith.constant 0 : i32
    %c0_i32_1 = arith.constant 0 : i32
    return %c0_i32, %c0_i32_0 : i32, i32
  }
  func.func @transform_5(%arg0: i32, %arg1: i32) -> (i32, i32) {
    %c0_i32 = arith.constant 0 : i32
    %c0_i32_0 = arith.constant 0 : i32
    return %arg0, %c0_i32 : i32, i32
  }
}

</mosaic_0001>

<bundles_post_ra>
// kernel: unet_forward.9
= control target key start
LH: loop header
LB: loop body
LE: loop exit
PB: predicated region body
PF: predicated region fallthrough
CT: control target
= control target key end

     0   :  { %vm136_vm0 = vcmask 523264   ;;  %s631_s1 = inlined_call_operand.vmem [shape: bf16[64,128], index: 1, kind: input, shape index: {}]   ;;  %s632_s0 = inlined_call_operand.vmem [shape: bf16[128,64], index: 0, kind: input, shape index: {}]   ;;  %s633_s2 = inlined_call_operand.vmem [shape: bf16[128,128], index: 2, kind: output, shape index: {}]  }
   0x1   :  { %v536_v0 = vld [vmem:[%s631_s1] sm:$0xff]   ;;  %v537_v1 = vld [vmem:[%s631_s1 + $0x8] sm:$0xff]   ;;  %v538_v2 = vld [vmem:[%s631_s1 + $0x10] sm:$0xff]  }
   0x2   :  { %504 = vmatprep.subr.bf16.mxu0 %v536_v0  ;;  %528 = vmatprep.subr.bf16.mxu1 %v536_v0  ;;  %v540_v3 = vld [vmem:[%s632_s0] sm:$0xff]   ;;  %v539_v5 = vld [vmem:[%s631_s1 + $0x18] sm:$0xff]   ;;  %v542_v6 = vld [vmem:[%s632_s0 + $0x8] sm:$0xff]  }
   0x3   :  { %505 = vmatpush3.bf16.msra.mxu0 %v536_v0  ;;  %532 = vmatpush3.bf16.msra.mxu1 %v536_v0  ;;  %v541_v4 = vld [vmem:[%s632_s0 + $0x20] sm:$0xff]   ;;  %v543_v7 = vld [vmem:[%s632_s0 + $0x28] sm:$0xff]   ;;  %v544_v8 = vld [vmem:[%s632_s0 + $0x10] sm:$0xff]  }
   0x4   :  { %506 = vmatprep.subr.bf16.mxu0 %v537_v1  ;;  %529 = vmatprep.subr.bf16.mxu1 %v537_v1  ;;  %v545_v9 = vld [vmem:[%s632_s0 + $0x30] sm:$0xff]   ;;  %v546_v10 = vld [vmem:[%s632_s0 + $0x18] sm:$0xff]  }
   0x5   :  { %512 = vmatprep.mubr.msk.bf16.mxu0 %vm136_vm0, %v540_v3  ;;  %520 = vmatprep.mubr.msk.bf16.mxu1 %vm136_vm0, %v541_v4  ;;  %v547_v11 = vld [vmem:[%s632_s0 + $0x38] sm:$0xff]  }
   0x7   :  { %507 = vmatpush3.bf16.msra.mxu0 %v537_v1  ;;  %533 = vmatpush3.bf16.msra.mxu1 %v537_v1 }
   0x8   :  { %508 = vmatprep.subr.bf16.mxu0 %v538_v2  ;;  %530 = vmatprep.subr.bf16.mxu1 %v538_v2 }
   0xb   :  { %509 = vmatpush3.bf16.msra.mxu0 %v538_v2  ;;  %534 = vmatpush3.bf16.msra.mxu1 %v538_v2 }
   0xc   :  { %510 = vmatprep.subr.bf16.mxu0 %v539_v5  ;;  %531 = vmatprep.subr.bf16.mxu1 %v539_v5 }
   0xf   :  { %511 = vmatpush3.bf16.msra.mxu0 %v539_v5  ;;  %535 = vmatpush3.bf16.msra.mxu1 %v539_v5 }
  0x12   :  { %513 = vmatmul.mubr.msk.bf16.vlgmr.msra.gmra.mrb[0].mxu0 %vm136_vm0, %v542_v6  ;;  %521 = vmatmul.mubr.msk.bf16.vlgmr.msra.gmra.mrb[0].mxu1 %vm136_vm0, %v543_v7 }
  0x13   :  { %516 = vmatprep.mubr.msk.bf16.mxu0 %vm136_vm0, %v544_v8  ;;  %524 = vmatprep.mubr.msk.bf16.mxu1 %vm136_vm0, %v545_v9 }
  0x1a   :  { %517 = vmatmul.mubr.msk.bf16.gmra.mrb[4].mxu0 %vm136_vm0, %v546_v10  ;;  %525 = vmatmul.mubr.msk.bf16.gmra.mrb[4].mxu1 %vm136_vm0, %v547_v11 }
  0xe5   :  { %v514_v12 = vpop.f32.mrb[0].mxu0  ;;  %v522_v13 = vpop.f32.mrb[0].mxu1 }
  0xe6   :  { %v195_v14 = vpop.f32.mrb[1].mxu0  ;;  %v227_v15 = vpop.f32.mrb[1].mxu1 }
  0xe7   :  { %v515_v16 = vpop.f32.mrb[2].mxu0  ;;  %v523_v17 = vpop.f32.mrb[2].mxu1 }
  0xe8   :  { %v453_v18 = vpack.c.bf16 %v515_v16, %v514_v12  ;;  %v473_v19 = vpack.c.bf16 %v523_v17, %v522_v13  ;;  %v198_v20 = vpop.f32.mrb[3].mxu0  ;;  %v230_v21 = vpop.f32.mrb[3].mxu1 }
  0xe9   :  { %v448_v22 = vpack.c.bf16 %v198_v20, %v195_v14  ;;  %v468_v23 = vpack.c.bf16 %v230_v21, %v227_v15 }
  0xea   :  { %485 = vst [vmem:[%s633_s2 + $0x8] sm:$0xff] %v453_v18   ;;  %489 = vst [vmem:[%s633_s2 + $0x28] sm:$0xff] %v473_v19  }
  0xeb   :  { %449 = vst [vmem:[%s633_s2] sm:$0xff] %v448_v22   ;;  %488 = vst [vmem:[%s633_s2 + $0x20] sm:$0xff] %v468_v23  }
  0xed   :  { %v518_v24 = vpop.f32.mrb[4].mxu0  ;;  %v526_v25 = vpop.f32.mrb[4].mxu1 }
  0xee   :  { %v211_v26 = vpop.f32.mrb[5].mxu0  ;;  %v243_v27 = vpop.f32.mrb[5].mxu1 }
  0xef   :  { %v519_v28 = vpop.f32.mrb[6].mxu0  ;;  %v527_v29 = vpop.f32.mrb[6].mxu1 }
  0xf0   :  { %v463_v30 = vpack.c.bf16 %v519_v28, %v518_v24  ;;  %v483_v31 = vpack.c.bf16 %v527_v29, %v526_v25  ;;  %v214_v32 = vpop.f32.mrb[7].mxu0  ;;  %v246_v33 = vpop.f32.mrb[7].mxu1 }
  0xf1   :  { %v458_v34 = vpack.c.bf16 %v214_v32, %v211_v26  ;;  %v478_v35 = vpack.c.bf16 %v246_v33, %v243_v27 }
  0xf2   :  { %487 = vst [vmem:[%s633_s2 + $0x18] sm:$0xff] %v463_v30   ;;  %491 = vst [vmem:[%s633_s2 + $0x38] sm:$0xff] %v483_v31  }
  0xf3   :  { %486 = vst [vmem:[%s633_s2 + $0x10] sm:$0xff] %v458_v34   ;;  %490 = vst [vmem:[%s633_s2 + $0x30] sm:$0xff] %v478_v35  }

// kernel: tile.38
= control target key start
LH: loop header
LB: loop body
LE: loop exit
PB: predicated region body
PF: predicated region fallthrough
CT: control target
= control target key end

     0   :  { %s28_s0 = inlined_call_operand.vmem [shape: f32[16], index: 0, kind: input, shape index: {}]   ;;  %s29_s1 = inlined_call_operand.vmem [shape: f32[16,16], index: 1, kind: output, shape index: {}]  }
   0x1   :  { %v4_v0 = vld [vmem:[%s28_s0] ss:$0 sm:$0xff] }
   0x2   :  { %5 = vst [vmem:[%s29_s1] sm:$0xff] %v4_v0  ;;  %8 = vst [vmem:[%s29_s1 + $0x8] sm:$0xff] %v4_v0 }

// kernel: tile.39
= control target key start
LH: loop header
LB: loop body
LE: loop exit
PB: predicated region body
PF: predicated region fallthrough
CT: control target
= control target key end

     0   :  { %s7_s6 = smov 3  ;;  %s21_s9 = smov 3  ;;  %vm4_vm0 = vcmask 130048   ;;  %vm11_vm1 = vcmask 1048448   ;;  %vm18_vm2 = vcmask 917248   ;;  %vm25_vm3 = vcmask 786048   ;;  %s128_s0 = inlined_call_operand.vmem [shape: f32[16,16], index: 0, kind: input, shape index: {}]   ;;  %s129_s1 = inlined_call_operand.vmem [shape: f32[1,256], index: 1, kind: output, shape index: {}]  }
   0x1   :  { %v66_v0 = vld [vmem:[%s128_s0 + $0x7] ss:$8 sm:%s7_s6]   ;;  %s81_s10 = smov 112   ;;  %v68_v1 = vld [vmem:[%s128_s0 + $0x5] ss:$8 sm:%s21_s9]   ;;  %s14_s13 = smov 3 }
   0x2   :  { %9 = vrot.lane.b32.xlu0 %v66_v0, %s81_s10  ;;  %s82_s14 = smov 80   ;;  %v67_v2 = vld [vmem:[%s128_s0 + $0x6] ss:$8 sm:%s14_s13]   ;;  %s28_s17 = smov 3  ;;  %vm32_vm4 = vcmask 654848   ;;  %vm39_vm5 = vcmask 523648  }
   0x3   :  { %23 = vrot.lane.b32.xlu1 %v68_v1, %s82_s14  ;;  %v69_v3 = vld [vmem:[%s128_s0 + $0x4] ss:$8 sm:%s28_s17]   ;;  %s35_s20 = smov 3  ;;  %s42_s21 = smov 3  ;;  %vm46_vm6 = vcmask 392448   ;;  %vm53_vm7 = vcmask 261248  }
   0x4   :  { %s83_s22 = smov 96   ;;  %s84_s23 = smov 64   ;;  %v70_v4 = vld [vmem:[%s128_s0 + $0x3] ss:$8 sm:%s35_s20]   ;;  %v71_v5 = vld [vmem:[%s128_s0 + $0x2] ss:$8 sm:%s42_s21]  }
   0x5   :  { %s2_s26 = smov 3  ;;  %s49_s29 = smov 3 }
   0x6   :  { %16 = vrot.lane.b32.xlu0 %v67_v2, %s83_s22  ;;  %v3_v6 = vld [vmem:[%s128_s0] ss:$8 sm:%s2_s26]   ;;  %s85_s3 = smov 48   ;;  %s86_s4 = smov 32  }
   0x7   :  { %30 = vrot.lane.b32.xlu1 %v69_v3, %s84_s23  ;;  %5 = vst.msk [vmem:[#allocation0] ss:$8 sm:$0x3] %vm4_vm0, %v3_v6   ;;  %v72_v7 = vld [vmem:[%s128_s0 + $0x1] ss:$8 sm:%s49_s29]   ;;  %s87_s0 = smov 16  }
   0xa   :  { %37 = vrot.lane.b32.xlu0 %v70_v4, %s85_s3 }
   0xb   :  { %44 = vrot.lane.b32.xlu1 %v71_v5, %s86_s4 }
   0xe   :  { %51 = vrot.lane.b32.xlu0 %v72_v7, %s87_s0 }
  0x74   :  { %v10_v8 = vpop.permute.xlu0 %9  }
  0x75   :  { %12 = vst.msk [vmem:[#allocation0] ss:$8 sm:$0x3] %vm11_vm1, %v10_v8   ;;  %v24_v9 = vpop.permute.xlu1 %23  }
  0x78   :  { %v17_v10 = vpop.permute.xlu0 %16  }
  0x79   :  { %19 = vst.msk [vmem:[#allocation0] ss:$8 sm:$0x3] %vm18_vm2, %v17_v10   ;;  %v31_v11 = vpop.permute.xlu1 %30  }
  0x7a   :  { %26 = vst.msk [vmem:[#allocation0] ss:$8 sm:$0x3] %vm25_vm3, %v24_v9  }
  0x7b   :  { %33 = vst.msk [vmem:[#allocation0] ss:$8 sm:$0x3] %vm32_vm4, %v31_v11  }
  0x7c   :  { %v38_v12 = vpop.permute.xlu0 %37  }
  0x7d   :  { %40 = vst.msk [vmem:[#allocation0] ss:$8 sm:$0x3] %vm39_vm5, %v38_v12   ;;  %v45_v13 = vpop.permute.xlu1 %44  }
  0x7e   :  { %47 = vst.msk [vmem:[#allocation0] ss:$8 sm:$0x3] %vm46_vm6, %v45_v13  }
  0x80   :  { %v52_v14 = vpop.permute.xlu0 %51  }
  0x81   :  { %54 = vst.msk [vmem:[#allocation0] ss:$8 sm:$0x3] %vm53_vm7, %v52_v14  }
  0x88   :  { %v58_v15 = vld [vmem:[#allocation0] sm:$0x1]  ;;  %v62_v16 = vld [vmem:[#allocation0 + $0x8] sm:$0x1] }
  0x89   :  { %60 = vst [vmem:[%s129_s1] sm:$0x1] %v58_v15  ;;  %73 = vst [vmem:[%s129_s1 + $0x1] sm:$0x1] %v62_v16 }

// kernel: unet_forward.11
= control target key start
LH: loop header
LB: loop body
LE: loop exit
PB: predicated region body
PF: predicated region fallthrough
CT: control target
= control target key end

     0   :  { %v56_v0 = vmov 0.0   ;;  %vm19_vm0 = vcmask 1043456   ;;  %s81_s0 = inlined_call_operand.vmem [shape: bf16[4,128], index: 0, kind: input, shape index: {}]   ;;  %s82_s1 = inlined_call_operand.vmem [shape: f32[1,128], index: 1, kind: output, shape index: {0}]   ;;  %s83_s2 = inlined_call_operand.vmem [shape: f32[1,128], index: 2, kind: output, shape index: {1}]  }
   0x1   :  { %14 = vst [vmem:[#allocation2] sm:$0x1] %v56_v0  ;;  %15 = vst [vmem:[#allocation3] sm:$0x1] %v56_v0  ;;  %v16_v1 = vld [vmem:[%s81_s0] sm:$0x3] }
   0x2   :  { %v17_v2 = vunpack.c.l.bf16 %v16_v1 }
   0x4   :  { %v20_v3 = vsel %vm19_vm0, %v17_v2, 0.0  ;;  %v30_v4 = vmul.f32 %v17_v2, %v17_v2 }
   0x5   :  { %v21_v5 = vrot.slane %v20_v3, 4 }
   0x6   :  { %v31_v6 = vsel %vm19_vm0, %v30_v4, 0.0 }
   0x7   :  { %v22_v7 = vadd.f32 %v21_v5, %v20_v3  ;;  %v32_v8 = vrot.slane %v31_v6, 4 }
   0x8   :  { %v18_v15 = vld [vmem:[#allocation2] sm:$0x1]  ;;  %v29_v18 = vld [vmem:[#allocation3] sm:$0x1] }
   0x9   :  { %v23_v9 = vrot.slane %v22_v7, 2  ;;  %v33_v10 = vadd.f32 %v32_v8, %v31_v6 }
   0xb   :  { %v24_v11 = vadd.f32 %v23_v9, %v22_v7  ;;  %v34_v12 = vrot.slane %v33_v10, 2 }
   0xd   :  { %v25_v13 = vrot.slane %v24_v11, 1  ;;  %v35_v14 = vadd.f32 %v34_v12, %v33_v10 }
   0xf   :  { %v26_v16 = vadd.f32 %v25_v13, %v24_v11  ;;  %v36_v17 = vrot.slane %v35_v14, 1 }
  0x11   :  { %v27_v19 = vadd.f32 %v26_v16, %v18_v15  ;;  %v37_v20 = vadd.f32 %v36_v17, %v35_v14 }
  0x13   :  { %28 = vst [vmem:[#allocation2] sm:$0x1] %v27_v19  ;;  %v38_v21 = vadd.f32 %v37_v20, %v29_v18 }
  0x15   :  { %39 = vst [vmem:[#allocation3] sm:$0x1] %v38_v21 }
  0x1a   :  { %v43_v22 = vld [vmem:[#allocation2] sm:$0x1] }
  0x1b   :  { %44 = vst [vmem:[%s82_s1] sm:$0x1] %v43_v22 }
  0x1c   :  { %v45_v23 = vld [vmem:[#allocation3] sm:$0x1] }
  0x1d   :  { %46 = vst [vmem:[%s83_s2] sm:$0x1] %v45_v23 }

// kernel: unet_forward.10
= control target key start
LH: loop header
LB: loop body
LE: loop exit
PB: predicated region body
PF: predicated region fallthrough
CT: control target
= control target key end

     0   :  { %s323_s1 = inlined_call_operand.vmem [shape: bf16[128,128], index: 1, kind: input, shape index: {}]   ;;  %s324_s0 = inlined_call_operand.vmem [shape: bf16[32,128], index: 0, kind: input, shape index: {}]   ;;  %s325_s2 = inlined_call_operand.vmem [shape: bf16[32,128], index: 2, kind: output, shape index: {}]  }
   0x1   :  { %v264_v0 = vld [vmem:[%s323_s1] sm:$0xff]   ;;  %v265_v1 = vld [vmem:[%s323_s1 + $0x8] sm:$0xff]   ;;  %v266_v2 = vld [vmem:[%s323_s1 + $0x10] sm:$0xff]  }
   0x2   :  { %244 = vmatprep.subr.bf16.mxu0 %v264_v0  ;;  %v267_v3 = vld [vmem:[%s323_s1 + $0x18] sm:$0xff]   ;;  %v215_v4 = vld [vmem:[%s324_s0] sm:$0xff]   ;;  %v269_v13 = vld [vmem:[%s323_s1 + $0x28] sm:$0xff]  }
   0x3   :  { %245 = vmatpush3.bf16.msra.mxu0 %v264_v0  ;;  %v216_v5 = vunpack.c.l.bf16 %v215_v4  ;;  %v217_v6 = vunpack.c.h.bf16 %v215_v4  ;;  %v268_v9 = vld [vmem:[%s323_s1 + $0x20] sm:$0xff]   ;;  %v232_v14 = vld [vmem:[%s324_s0 + $0x8] sm:$0xff]   ;;  %v270_v17 = vld [vmem:[%s323_s1 + $0x30] sm:$0xff]  }
   0x4   :  { %246 = vmatprep.subr.bf16.mxu0 %v265_v1  ;;  %v220_v15 = vunpack.c.l.bf16 %v232_v14  ;;  %v221_v16 = vunpack.c.h.bf16 %v232_v14  ;;  %v271_v20 = vld [vmem:[%s323_s1 + $0x38] sm:$0xff]  }
   0x5   :  { %vm28_vm0 = vcmp.ge.f32.partialorder %v216_v5, 0.0  ;;  %vm29_vm1 = vcmp.ge.f32.partialorder %v217_v6, 0.0  ;;  %v32_v7 = vmul.f32 0.2, %v216_v5  ;;  %v33_v8 = vmul.f32 0.2, %v217_v6 }
   0x6   :  { %v34_v18 = vmul.f32 0.2, %v220_v15  ;;  %v35_v19 = vmul.f32 0.2, %v221_v16  ;;  %vm30_vm2 = vcmp.ge.f32.partialorder %v220_v15, 0.0  ;;  %vm31_vm3 = vcmp.ge.f32.partialorder %v221_v16, 0.0 }
   0x7   :  { %247 = vmatpush3.bf16.msra.mxu0 %v265_v1  ;;  %v36_v10 = vsel %vm28_vm0, %v216_v5, %v32_v7  ;;  %v37_v11 = vsel %vm29_vm1, %v217_v6, %v33_v8 }
   0x8   :  { %248 = vmatprep.subr.bf16.mxu0 %v266_v2  ;;  %v40_v12 = vpack.c.bf16 %v37_v11, %v36_v10  ;;  %v38_v21 = vsel %vm30_vm2, %v220_v15, %v34_v18  ;;  %v39_v22 = vsel %vm31_vm3, %v221_v16, %v35_v19 }
   0x9   :  { %v41_v23 = vpack.c.bf16 %v39_v22, %v38_v21 }
   0xa   :  { %260 = vmatprep.mubr.bf16.mxu0 %v40_v12 }
   0xb   :  { %249 = vmatpush3.bf16.msra.mxu0 %v266_v2 }
   0xc   :  { %250 = vmatprep.subr.bf16.mxu0 %v267_v3 }
   0xf   :  { %251 = vmatpush3.bf16.msra.mxu0 %v267_v3 }
  0x10   :  { %252 = vmatprep.subr.bf16.mxu0 %v268_v9 }
  0x13   :  { %253 = vmatpush3.bf16.msra.mxu0 %v268_v9 }
  0x14   :  { %254 = vmatprep.subr.bf16.mxu0 %v269_v13 }
  0x17   :  { %255 = vmatpush3.bf16.msra.mxu0 %v269_v13 }
  0x18   :  { %256 = vmatprep.subr.bf16.mxu0 %v270_v17 }
  0x1b   :  { %257 = vmatpush3.bf16.msra.mxu0 %v270_v17 }
  0x1c   :  { %258 = vmatprep.subr.bf16.mxu0 %v271_v20 }
  0x1f   :  { %259 = vmatpush3.bf16.msra.mxu0 %v271_v20 }
  0x22   :  { %261 = vmatmul.mubr.bf16.vlgmr.msra.gmra.mrb[0].mxu0 %v41_v23 }
  0xf5   :  { %v262_v24 = vpop.f32.mrb[0].mxu0 }
  0xf6   :  { %v144_v25 = vpop.f32.mrb[1].mxu0 }
  0xf7   :  { %v263_v26 = vpop.f32.mrb[2].mxu0 }
  0xf8   :  { %v230_v27 = vpack.c.bf16 %v263_v26, %v262_v24  ;;  %v147_v28 = vpop.f32.mrb[3].mxu0 }
  0xf9   :  { %v225_v29 = vpack.c.bf16 %v147_v28, %v144_v25 }
  0xfa   :  { %233 = vst [vmem:[%s325_s2 + $0x8] sm:$0xff] %v230_v27  }
  0xfb   :  { %226 = vst [vmem:[%s325_s2] sm:$0xff] %v225_v29  }

// kernel: tile.48
= control target key start
LH: loop header
LB: loop body
LE: loop exit
PB: predicated region body
PF: predicated region fallthrough
CT: control target
= control target key end

     0   :  { %s22_s0 = inlined_call_operand.vmem [shape: f32[32], index: 0, kind: input, shape index: {}]   ;;  %s23_s1 = inlined_call_operand.vmem [shape: f32[4,32], index: 1, kind: output, shape index: {}]  }
   0x1   :  { %v4_v0 = vld [vmem:[%s22_s0] ss:$0 sm:$0xff] }
   0x2   :  { %5 = vst [vmem:[%s23_s1] sm:$0xf] %v4_v0 }

// kernel: unet_forward.12
= control target key start
LH: loop header
LB: loop body
LE: loop exit
PB: predicated region body
PF: predicated region fallthrough
CT: control target
= control target key end

     0   :  { %v32_v5 = vlaneseq  ;;  %s421_s1 = inlined_call_operand.vmem [shape: bf16[256,128], index: 1, kind: input, shape index: {}]   ;;  %s422_s0 = inlined_call_operand.vmem [shape: bf16[16,256], index: 0, kind: input, shape index: {}]   ;;  %s423_s2 = inlined_call_operand.vmem [shape: f32[1,256], index: 2, kind: input, shape index: {}]   ;;  %s424_s3 = inlined_call_operand.vmem [shape: f32[1,256], index: 3, kind: input, shape index: {}]   ;;  %s425_s4 = inlined_call_operand.vmem [shape: bf16[16,128], index: 4, kind: output, shape index: {}]  }
   0x1   :  { %v317_v0 = vld [vmem:[%s421_s1 + $0x40] sm:$0xff]   ;;  %v319_v2 = vld [vmem:[%s421_s1 + $0x48] sm:$0xff]   ;;  %v321_v4 = vld [vmem:[%s421_s1 + $0x50] sm:$0xff]  }
   0x2   :  { %v318_v1 = vld [vmem:[%s421_s1] sm:$0xff]   ;;  %295 = vmatprep.subr.bf16.mxu0 %v317_v0  ;;  %v320_v3 = vld [vmem:[%s421_s1 + $0x8] sm:$0xff]   ;;  %v322_v6 = vld [vmem:[%s421_s1 + $0x10] sm:$0xff]   ;;  %v33_v8 = vshrl.u32 %v32_v5, 7 }
   0x3   :  { %296 = vmatpush3.bf16.msra.mxu0 %v318_v1  ;;  %v323_v7 = vld [vmem:[%s421_s1 + $0x58] sm:$0xff]   ;;  %v325_v10 = vld [vmem:[%s421_s1 + $0x60] sm:$0xff]   ;;  %v327_v14 = vld [vmem:[%s421_s1 + $0x68] sm:$0xff]  }
   0x4   :  { %297 = vmatprep.subr.bf16.mxu0 %v319_v2  ;;  %v324_v9 = vld [vmem:[%s421_s1 + $0x18] sm:$0xff]   ;;  %v34_v11 = vsub.s32 0, %v33_v8  ;;  %v326_v12 = vld [vmem:[%s421_s1 + $0x20] sm:$0xff]   ;;  %v38_v13 = vsub.s32 1, %v33_v8  ;;  %v25_v16 = vld [vmem:[%s422_s0 + $0x8] sm:$0xff] }
   0x5   :  { %v24_v15 = vld [vmem:[%s422_s0] sm:$0xff]  ;;  %v28_v20 = vunpack.c.l.bf16 %v25_v16  ;;  %v29_v21 = vunpack.c.h.bf16 %v25_v16  ;;  %v328_v27 = vld [vmem:[%s421_s1 + $0x28] sm:$0xff]   ;;  %v329_v28 = vld [vmem:[%s421_s1 + $0x70] sm:$0xff]  }
   0x6   :  { %v30_v17 = vld [vmem:[%s423_s2] sm:$0x3]  ;;  %v26_v18 = vunpack.c.l.bf16 %v24_v15  ;;  %v27_v19 = vunpack.c.h.bf16 %v24_v15  ;;  %v330_v37 = vld [vmem:[%s421_s1 + $0x30] sm:$0xff]   ;;  %v331_v38 = vld [vmem:[%s421_s1 + $0x78] sm:$0xff]  }
   0x7   :  { %298 = vmatpush3.bf16.msra.mxu0 %v320_v3  ;;  %v46_v22 = vld [vmem:[%s424_s3] sm:$0x3]  ;;  %v35_v23 = vrot.slane %v30_v17, %v34_v11  ;;  %v39_v24 = vrot.slane %v30_v17, %v38_v13  ;;  %v332_v45 = vld [vmem:[%s421_s1 + $0x38] sm:$0xff]  }
   0x8   :  { %299 = vmatprep.subr.bf16.mxu0 %v321_v4  ;;  %v51_v25 = vrot.slane %v46_v22, %v34_v11  ;;  %v55_v26 = vrot.slane %v46_v22, %v38_v13 }
   0x9   :  { %v43_v29 = vmul.f32 %v39_v24, %v27_v19  ;;  %v45_v30 = vmul.f32 %v39_v24, %v29_v21  ;;  %v42_v31 = vmul.f32 %v35_v23, %v26_v18  ;;  %v44_v32 = vmul.f32 %v35_v23, %v28_v20 }
   0xb   :  { %300 = vmatpush3.bf16.msra.mxu0 %v322_v6  ;;  %v59_v33 = vadd.f32 %v55_v26, %v43_v29  ;;  %v61_v34 = vadd.f32 %v55_v26, %v45_v30  ;;  %v58_v35 = vadd.f32 %v51_v25, %v42_v31  ;;  %v60_v36 = vadd.f32 %v51_v25, %v44_v32 }
   0xc   :  { %301 = vmatprep.subr.bf16.mxu0 %v323_v7 }
   0xd   :  { %vm63_vm0 = vcmp.ge.f32.partialorder %v59_v33, 0.0  ;;  %vm65_vm1 = vcmp.ge.f32.partialorder %v61_v34, 0.0  ;;  %v67_v39 = vmul.f32 0.2, %v59_v33  ;;  %v69_v40 = vmul.f32 0.2, %v61_v34 }
   0xe   :  { %vm62_vm2 = vcmp.ge.f32.partialorder %v58_v35, 0.0  ;;  %vm64_vm3 = vcmp.ge.f32.partialorder %v60_v36, 0.0  ;;  %v66_v41 = vmul.f32 0.2, %v58_v35  ;;  %v68_v42 = vmul.f32 0.2, %v60_v36 }
   0xf   :  { %302 = vmatpush3.bf16.msra.mxu0 %v324_v9  ;;  %v71_v43 = vsel %vm63_vm0, %v59_v33, %v67_v39  ;;  %v73_v44 = vsel %vm65_vm1, %v61_v34, %v69_v40 }
  0x10   :  { %303 = vmatprep.subr.bf16.mxu0 %v325_v10  ;;  %v75_v46 = vpack.c.bf16 %v73_v44, %v71_v43  ;;  %v70_v47 = vsel %vm62_vm2, %v58_v35, %v66_v41  ;;  %v72_v48 = vsel %vm64_vm3, %v60_v36, %v68_v42 }
  0x11   :  { %v74_v49 = vpack.c.bf16 %v72_v48, %v70_v47 }
  0x12   :  { %238 = vmatprep.mubr.bf16.mxu0 %v75_v46 }
  0x13   :  { %304 = vmatpush3.bf16.msra.mxu0 %v326_v12 }
  0x14   :  { %305 = vmatprep.subr.bf16.mxu0 %v327_v14 }
  0x17   :  { %306 = vmatpush3.bf16.msra.mxu0 %v328_v27 }
  0x18   :  { %307 = vmatprep.subr.bf16.mxu0 %v329_v28 }
  0x1b   :  { %308 = vmatpush3.bf16.msra.mxu0 %v330_v37 }
  0x1c   :  { %309 = vmatprep.subr.bf16.mxu0 %v331_v38 }
  0x1f   :  { %310 = vmatpush3.bf16.msra.mxu0 %v332_v45 }
  0x22   :  { %239 = vmatmul.mubr.bf16.vlgmr.msra.gmra.mrb[0].mxu0 %v74_v49 }
  0xf5   :  { %v311_v50 = vpop.f32.mrb[0].mxu0 }
  0xf6   :  { %v312_v51 = vpop.f32.mrb[1].mxu0 }
  0xf7   :  { %v313_v52 = vadd.f32 %v312_v51, %v311_v50  ;;  %v314_v53 = vpop.f32.mrb[2].mxu0 }
  0xf8   :  { %v315_v54 = vpop.f32.mrb[3].mxu0 }
  0xf9   :  { %v316_v55 = vadd.f32 %v315_v54, %v314_v53 }
  0xfb   :  { %v293_v56 = vpack.c.bf16 %v316_v55, %v313_v52 }
  0xfd   :  { %294 = vst [vmem:[%s425_s4] sm:$0xff] %v293_v56  }

// kernel: tile.49
= control target key start
LH: loop header
LB: loop body
LE: loop exit
PB: predicated region body
PF: predicated region fallthrough
CT: control target
= control target key end

     0   :  { %vm7_vm0 = vcmask 261120   ;;  %s37_s8 = smov 32   ;;  %s38_s9 = smov 64   ;;  %vm13_vm1 = vcmask 1048320   ;;  %vm19_vm2 = vcmask 785920   ;;  %vm25_vm3 = vcmask 523520   ;;  %s55_s0 = inlined_call_operand.vmem [shape: f32[4,32], index: 0, kind: input, shape index: {}]   ;;  %s56_s1 = inlined_call_operand.vmem [shape: f32[1,128], index: 1, kind: output, shape index: {}]  }
   0x1   :  { %v4_v0 = vld [vmem:[%s55_s0] sm:$0xf]  ;;  %s36_s0 = smov 96  }
   0x2   :  { %5 = vst [vmem:[#allocation1] sm:$0xf] %v4_v0 }
   0x9   :  { %v10_v1 = vld [vmem:[#allocation1 + $0x3] sm:$0x1]   ;;  %v22_v2 = vld [vmem:[#allocation1 + $0x1] sm:$0x1]   ;;  %v6_v3 = vld [vmem:[#allocation1] sm:$0x1]  }
   0xa   :  { %11 = vrot.lane.b32.xlu0 %v10_v1, %s36_s0  ;;  %23 = vrot.lane.b32.xlu1 %v22_v2, %s37_s8  ;;  %v16_v4 = vld [vmem:[#allocation1 + $0x2] sm:$0x1]   ;;  %8 = vst.msk [vmem:[#allocation0] sm:$0x1] %vm7_vm0, %v6_v3  }
   0xe   :  { %17 = vrot.lane.b32.xlu0 %v16_v4, %s38_s9 }
  0x7c   :  { %v12_v5 = vpop.permute.xlu0 %11   ;;  %v24_v6 = vpop.permute.xlu1 %23  }
  0x7d   :  { %14 = vst.msk [vmem:[#allocation0] sm:$0x1] %vm13_vm1, %v12_v5  }
  0x80   :  { %v18_v7 = vpop.permute.xlu0 %17  }
  0x81   :  { %20 = vst.msk [vmem:[#allocation0] sm:$0x1] %vm19_vm2, %v18_v7  }
  0x82   :  { %26 = vst.msk [vmem:[#allocation0] sm:$0x1] %vm25_vm3, %v24_v6  }
  0x89   :  { %v30_v8 = vld [vmem:[#allocation0] sm:$0x1] }
  0x8a   :  { %32 = vst [vmem:[%s56_s1] sm:$0x1] %v30_v8 }

// kernel: unet_forward.13
= control target key start
LH: loop header
LB: loop body
LE: loop exit
PB: predicated region body
PF: predicated region fallthrough
CT: control target
= control target key end

     0   :  { %s315_s1 = inlined_call_operand.vmem [shape: bf16[128,128], index: 1, kind: input, shape index: {}]   ;;  %s316_s0 = inlined_call_operand.vmem [shape: bf16[32,128], index: 0, kind: input, shape index: {}]   ;;  %s317_s2 = inlined_call_operand.vmem [shape: bf16[32,128], index: 2, kind: output, shape index: {}]  }
   0x1   :  { %v256_v0 = vld [vmem:[%s315_s1] sm:$0xff]   ;;  %v257_v1 = vld [vmem:[%s315_s1 + $0x8] sm:$0xff]   ;;  %v258_v2 = vld [vmem:[%s315_s1 + $0x10] sm:$0xff]  }
   0x2   :  { %236 = vmatprep.subr.bf16.mxu0 %v256_v0  ;;  %v259_v3 = vld [vmem:[%s315_s1 + $0x18] sm:$0xff]   ;;  %v207_v4 = vld [vmem:[%s316_s0] sm:$0xff]   ;;  %v261_v11 = vld [vmem:[%s315_s1 + $0x28] sm:$0xff]  }
   0x3   :  { %237 = vmatpush3.bf16.msra.mxu0 %v256_v0  ;;  %v208_v5 = vunpack.c.l.bf16 %v207_v4  ;;  %v209_v6 = vunpack.c.h.bf16 %v207_v4  ;;  %v260_v9 = vld [vmem:[%s315_s1 + $0x20] sm:$0xff]   ;;  %v224_v12 = vld [vmem:[%s316_s0 + $0x8] sm:$0xff]   ;;  %v262_v13 = vld [vmem:[%s315_s1 + $0x30] sm:$0xff]  }
   0x4   :  { %238 = vmatprep.subr.bf16.mxu0 %v257_v1  ;;  %v212_v14 = vunpack.c.l.bf16 %v224_v12  ;;  %v213_v15 = vunpack.c.h.bf16 %v224_v12  ;;  %v263_v16 = vld [vmem:[%s315_s1 + $0x38] sm:$0xff]  }
   0x5   :  { %v28_v7 = vmax.f32 %v208_v5, 0.0  ;;  %v29_v8 = vmax.f32 %v209_v6, 0.0 }
   0x6   :  { %v30_v17 = vmax.f32 %v212_v14, 0.0  ;;  %v31_v18 = vmax.f32 %v213_v15, 0.0 }
   0x7   :  { %239 = vmatpush3.bf16.msra.mxu0 %v257_v1  ;;  %v32_v10 = vpack.c.bf16 %v29_v8, %v28_v7 }
   0x8   :  { %240 = vmatprep.subr.bf16.mxu0 %v258_v2  ;;  %v33_v19 = vpack.c.bf16 %v31_v18, %v30_v17 }
   0x9   :  { %252 = vmatprep.mubr.bf16.mxu0 %v32_v10 }
   0xb   :  { %241 = vmatpush3.bf16.msra.mxu0 %v258_v2 }
   0xc   :  { %242 = vmatprep.subr.bf16.mxu0 %v259_v3 }
   0xf   :  { %243 = vmatpush3.bf16.msra.mxu0 %v259_v3 }
  0x10   :  { %244 = vmatprep.subr.bf16.mxu0 %v260_v9 }
  0x13   :  { %245 = vmatpush3.bf16.msra.mxu0 %v260_v9 }
  0x14   :  { %246 = vmatprep.subr.bf16.mxu0 %v261_v11 }
  0x17   :  { %247 = vmatpush3.bf16.msra.mxu0 %v261_v11 }
  0x18   :  { %248 = vmatprep.subr.bf16.mxu0 %v262_v13 }
  0x1b   :  { %249 = vmatpush3.bf16.msra.mxu0 %v262_v13 }
  0x1c   :  { %250 = vmatprep.subr.bf16.mxu0 %v263_v16 }
  0x1f   :  { %251 = vmatpush3.bf16.msra.mxu0 %v263_v16 }
  0x22   :  { %253 = vmatmul.mubr.bf16.vlgmr.msra.gmra.mrb[0].mxu0 %v33_v19 }
  0xf5   :  { %v254_v20 = vpop.f32.mrb[0].mxu0 }
  0xf6   :  { %v136_v21 = vpop.f32.mrb[1].mxu0 }
  0xf7   :  { %v255_v22 = vpop.f32.mrb[2].mxu0 }
  0xf8   :  { %v222_v23 = vpack.c.bf16 %v255_v22, %v254_v20  ;;  %v139_v24 = vpop.f32.mrb[3].mxu0 }
  0xf9   :  { %v217_v25 = vpack.c.bf16 %v139_v24, %v136_v21 }
  0xfa   :  { %225 = vst [vmem:[%s317_s2 + $0x8] sm:$0xff] %v222_v23  }
  0xfb   :  { %218 = vst [vmem:[%s317_s2] sm:$0xff] %v217_v25  }

// kernel: unet_forward.15
= control target key start
LH: loop header
LB: loop body
LE: loop exit
PB: predicated region body
PF: predicated region fallthrough
CT: control target
= control target key end

     0   :  { %s503_s1 = inlined_call_operand.vmem [shape: bf16[128,128], index: 1, kind: input, shape index: {}]   ;;  %s504_s0 = inlined_call_operand.vmem [shape: bf16[64,128], index: 0, kind: input, shape index: {}]   ;;  %s505_s2 = inlined_call_operand.vmem [shape: f32[1,128], index: 2, kind: input, shape index: {}]   ;;  %s506_s3 = inlined_call_operand.vmem [shape: f32[1,128], index: 3, kind: input, shape index: {}]   ;;  %s507_s4 = inlined_call_operand.vmem [shape: bf16[64,128], index: 4, kind: output, shape index: {}]  }
   0x1   :  { %v416_v0 = vld [vmem:[%s503_s1] sm:$0xff]   ;;  %v417_v1 = vld [vmem:[%s503_s1 + $0x8] sm:$0xff]   ;;  %v418_v2 = vld [vmem:[%s503_s1 + $0x10] sm:$0xff]  }
   0x2   :  { %376 = vmatprep.subr.bf16.mxu0 %v416_v0  ;;  %400 = vmatprep.subr.bf16.mxu1 %v416_v0  ;;  %v419_v3 = vld [vmem:[%s503_s1 + $0x18] sm:$0xff]   ;;  %v323_v4 = vld [vmem:[%s504_s0] sm:$0xff]   ;;  %v359_v8 = vld [vmem:[%s504_s0 + $0x10] sm:$0xff]  }
   0x3   :  { %377 = vmatpush3.bf16.msra.mxu0 %v416_v0  ;;  %408 = vmatpush3.bf16.msra.mxu1 %v416_v0  ;;  %v296_v5 = vld [vmem:[%s505_s2] ss:$0 sm:$0xff]  ;;  %v324_v6 = vunpack.c.l.bf16 %v323_v4  ;;  %v325_v7 = vunpack.c.h.bf16 %v323_v4  ;;  %v332_v10 = vunpack.c.l.bf16 %v359_v8  ;;  %v333_v11 = vunpack.c.h.bf16 %v359_v8  ;;  %v358_v12 = vld [vmem:[%s504_s0 + $0x8] sm:$0xff]   ;;  %v360_v15 = vld [vmem:[%s504_s0 + $0x18] sm:$0xff]  }
   0x4   :  { %378 = vmatprep.subr.bf16.mxu0 %v417_v1  ;;  %401 = vmatprep.subr.bf16.mxu1 %v417_v1  ;;  %v297_v9 = vld [vmem:[%s506_s3] ss:$0 sm:$0xff]  ;;  %v328_v21 = vunpack.c.l.bf16 %v358_v12  ;;  %v329_v22 = vunpack.c.h.bf16 %v358_v12  ;;  %v336_v25 = vunpack.c.l.bf16 %v360_v15  ;;  %v337_v26 = vunpack.c.h.bf16 %v360_v15  ;;  %v421_v29 = vld [vmem:[%s503_s1 + $0x28] sm:$0xff]   ;;  %v422_v38 = vld [vmem:[%s503_s1 + $0x30] sm:$0xff]  }
   0x5   :  { %v53_v13 = vmul.f32 %v324_v6, %v296_v5  ;;  %v54_v14 = vmul.f32 %v325_v7, %v296_v5  ;;  %v420_v16 = vld [vmem:[%s503_s1 + $0x20] sm:$0xff]   ;;  %v57_v17 = vmul.f32 %v332_v10, %v296_v5  ;;  %v58_v18 = vmul.f32 %v333_v11, %v296_v5  ;;  %v423_v43 = vld [vmem:[%s503_s1 + $0x38] sm:$0xff]  }
   0x6   :  { %v55_v33 = vmul.f32 %v328_v21, %v296_v5  ;;  %v56_v35 = vmul.f32 %v329_v22, %v296_v5  ;;  %v59_v36 = vmul.f32 %v336_v25, %v296_v5  ;;  %v60_v37 = vmul.f32 %v337_v26, %v296_v5 }
   0x7   :  { %379 = vmatpush3.bf16.msra.mxu0 %v417_v1  ;;  %409 = vmatpush3.bf16.msra.mxu1 %v417_v1  ;;  %v68_v19 = vadd.f32 %v297_v9, %v53_v13  ;;  %v69_v20 = vadd.f32 %v297_v9, %v54_v14  ;;  %v72_v23 = vadd.f32 %v297_v9, %v57_v17 }
   0x8   :  { %380 = vmatprep.subr.bf16.mxu0 %v418_v2  ;;  %402 = vmatprep.subr.bf16.mxu1 %v418_v2  ;;  %v73_v24 = vadd.f32 %v297_v9, %v58_v18  ;;  %v70_v39 = vadd.f32 %v297_v9, %v55_v33  ;;  %v71_v40 = vadd.f32 %v297_v9, %v56_v35 }
   0x9   :  { %v76_v27 = vmax.f32 %v68_v19, 0.0  ;;  %v77_v28 = vmax.f32 %v69_v20, 0.0  ;;  %v80_v30 = vmax.f32 %v72_v23, 0.0  ;;  %v74_v41 = vadd.f32 %v297_v9, %v59_v36 }
   0xa   :  { %v81_v31 = vmax.f32 %v73_v24, 0.0  ;;  %v75_v42 = vadd.f32 %v297_v9, %v60_v37  ;;  %v78_v44 = vmax.f32 %v70_v39, 0.0  ;;  %v79_v45 = vmax.f32 %v71_v40, 0.0 }
   0xb   :  { %381 = vmatpush3.bf16.msra.mxu0 %v418_v2  ;;  %410 = vmatpush3.bf16.msra.mxu1 %v418_v2  ;;  %v84_v32 = vpack.c.bf16 %v77_v28, %v76_v27  ;;  %v82_v46 = vmax.f32 %v74_v41, 0.0 }
   0xc   :  { %382 = vmatprep.subr.bf16.mxu0 %v419_v3  ;;  %403 = vmatprep.subr.bf16.mxu1 %v419_v3  ;;  %v86_v34 = vpack.c.bf16 %v81_v31, %v80_v30  ;;  %v83_v47 = vmax.f32 %v75_v42, 0.0  ;;  %v85_v48 = vpack.c.bf16 %v79_v45, %v78_v44 }
   0xd   :  { %392 = vmatprep.mubr.bf16.mxu0 %v84_v32 }
   0xe   :  { %396 = vmatprep.mubr.bf16.mxu1 %v86_v34  ;;  %v87_v49 = vpack.c.bf16 %v83_v47, %v82_v46 }
   0xf   :  { %383 = vmatpush3.bf16.msra.mxu0 %v419_v3  ;;  %411 = vmatpush3.bf16.msra.mxu1 %v419_v3 }
  0x10   :  { %384 = vmatprep.subr.bf16.mxu0 %v420_v16  ;;  %404 = vmatprep.subr.bf16.mxu1 %v420_v16 }
  0x13   :  { %385 = vmatpush3.bf16.msra.mxu0 %v420_v16  ;;  %412 = vmatpush3.bf16.msra.mxu1 %v420_v16 }
  0x14   :  { %386 = vmatprep.subr.bf16.mxu0 %v421_v29  ;;  %405 = vmatprep.subr.bf16.mxu1 %v421_v29 }
  0x17   :  { %387 = vmatpush3.bf16.msra.mxu0 %v421_v29  ;;  %413 = vmatpush3.bf16.msra.mxu1 %v421_v29 }
  0x18   :  { %388 = vmatprep.subr.bf16.mxu0 %v422_v38  ;;  %406 = vmatprep.subr.bf16.mxu1 %v422_v38 }
  0x1b   :  { %389 = vmatpush3.bf16.msra.mxu0 %v422_v38  ;;  %414 = vmatpush3.bf16.msra.mxu1 %v422_v38 }
  0x1c   :  { %390 = vmatprep.subr.bf16.mxu0 %v423_v43  ;;  %407 = vmatprep.subr.bf16.mxu1 %v423_v43 }
  0x1f   :  { %391 = vmatpush3.bf16.msra.mxu0 %v423_v43  ;;  %415 = vmatpush3.bf16.msra.mxu1 %v423_v43 }
  0x22   :  { %393 = vmatmul.mubr.bf16.vlgmr.msra.gmra.mrb[0].mxu0 %v85_v48  ;;  %397 = vmatmul.mubr.bf16.vlgmr.msra.gmra.mrb[0].mxu1 %v87_v49 }
  0xf5   :  { %v394_v50 = vpop.f32.mrb[0].mxu0  ;;  %v398_v51 = vpop.f32.mrb[0].mxu1 }
  0xf6   :  { %v194_v52 = vpop.f32.mrb[1].mxu0  ;;  %v210_v53 = vpop.f32.mrb[1].mxu1 }
  0xf7   :  { %v395_v54 = vpop.f32.mrb[2].mxu0  ;;  %v399_v55 = vpop.f32.mrb[2].mxu1 }
  0xf8   :  { %v346_v56 = vpack.c.bf16 %v395_v54, %v394_v50  ;;  %v356_v57 = vpack.c.bf16 %v399_v55, %v398_v51  ;;  %v197_v58 = vpop.f32.mrb[3].mxu0  ;;  %v213_v59 = vpop.f32.mrb[3].mxu1 }
  0xf9   :  { %v341_v60 = vpack.c.bf16 %v197_v58, %v194_v52  ;;  %v351_v61 = vpack.c.bf16 %v213_v59, %v210_v53 }
  0xfa   :  { %361 = vst [vmem:[%s507_s4 + $0x8] sm:$0xff] %v346_v56   ;;  %363 = vst [vmem:[%s507_s4 + $0x18] sm:$0xff] %v356_v57  }
  0xfb   :  { %342 = vst [vmem:[%s507_s4] sm:$0xff] %v341_v60   ;;  %362 = vst [vmem:[%s507_s4 + $0x10] sm:$0xff] %v351_v61  }

// kernel: tile.58
= control target key start
LH: loop header
LB: loop body
LE: loop exit
PB: predicated region body
PF: predicated region fallthrough
CT: control target
= control target key end

     0   :  { %s22_s0 = inlined_call_operand.vmem [shape: f32[16], index: 0, kind: input, shape index: {}]   ;;  %s23_s1 = inlined_call_operand.vmem [shape: f32[4,16], index: 1, kind: output, shape index: {}]  }
   0x1   :  { %v4_v0 = vld [vmem:[%s22_s0] ss:$0 sm:$0xff] }
   0x2   :  { %5 = vst [vmem:[%s23_s1] sm:$0xf] %v4_v0 }

// kernel: tile.59
= control target key start
LH: loop header
LB: loop body
LE: loop exit
PB: predicated region body
PF: predicated region fallthrough
CT: control target
= control target key end

     0   :  { %vm7_vm0 = vcmask 130048   ;;  %s37_s8 = smov 16   ;;  %s38_s9 = smov 32   ;;  %vm13_vm1 = vcmask 523648   ;;  %vm19_vm2 = vcmask 392448   ;;  %vm25_vm3 = vcmask 261248   ;;  %s55_s0 = inlined_call_operand.vmem [shape: f32[4,16], index: 0, kind: input, shape index: {}]   ;;  %s56_s1 = inlined_call_operand.vmem [shape: f32[1,64], index: 1, kind: output, shape index: {}]  }
   0x1   :  { %v4_v0 = vld [vmem:[%s55_s0] sm:$0xf]  ;;  %s36_s0 = smov 48  }
   0x2   :  { %5 = vst [vmem:[#allocation1] sm:$0xf] %v4_v0 }
   0x9   :  { %v10_v1 = vld [vmem:[#allocation1 + $0x3] sm:$0x1]   ;;  %v22_v2 = vld [vmem:[#allocation1 + $0x1] sm:$0x1]   ;;  %v6_v3 = vld [vmem:[#allocation1] sm:$0x1]  }
   0xa   :  { %11 = vrot.lane.b32.xlu0 %v10_v1, %s36_s0  ;;  %23 = vrot.lane.b32.xlu1 %v22_v2, %s37_s8  ;;  %v16_v4 = vld [vmem:[#allocation1 + $0x2] sm:$0x1]   ;;  %8 = vst.msk [vmem:[#allocation0] sm:$0x1] %vm7_vm0, %v6_v3  }
   0xe   :  { %17 = vrot.lane.b32.xlu0 %v16_v4, %s38_s9 }
  0x7c   :  { %v12_v5 = vpop.permute.xlu0 %11   ;;  %v24_v6 = vpop.permute.xlu1 %23  }
  0x7d   :  { %14 = vst.msk [vmem:[#allocation0] sm:$0x1] %vm13_vm1, %v12_v5  }
  0x80   :  { %v18_v7 = vpop.permute.xlu0 %17  }
  0x81   :  { %20 = vst.msk [vmem:[#allocation0] sm:$0x1] %vm19_vm2, %v18_v7  }
  0x82   :  { %26 = vst.msk [vmem:[#allocation0] sm:$0x1] %vm25_vm3, %v24_v6  }
  0x89   :  { %v30_v8 = vld [vmem:[#allocation0] sm:$0x1] }
  0x8a   :  { %32 = vst [vmem:[%s56_s1] sm:$0x1] %v30_v8 }

// kernel: unet_forward.16
= control target key start
LH: loop header
LB: loop body
LE: loop exit
PB: predicated region body
PF: predicated region fallthrough
CT: control target
= control target key end

     0   :  { %v53_v0 = vmov 0.0   ;;  %s78_s0 = inlined_call_operand.vmem [shape: bf16[8,128], index: 0, kind: input, shape index: {}]   ;;  %s79_s1 = inlined_call_operand.vmem [shape: f32[1,128], index: 1, kind: output, shape index: {0}]   ;;  %s80_s2 = inlined_call_operand.vmem [shape: f32[1,128], index: 2, kind: output, shape index: {1}]  }
   0x1   :  { %14 = vst [vmem:[#allocation2] sm:$0x1] %v53_v0  ;;  %15 = vst [vmem:[#allocation3] sm:$0x1] %v53_v0  ;;  %v16_v1 = vld [vmem:[%s78_s0] sm:$0xf] }
   0x2   :  { %v17_v2 = vunpack.c.l.bf16 %v16_v1 }
   0x4   :  { %v19_v3 = vrot.slane %v17_v2, 4  ;;  %v28_v4 = vmul.f32 %v17_v2, %v17_v2 }
   0x6   :  { %v20_v5 = vadd.f32 %v19_v3, %v17_v2  ;;  %v29_v6 = vrot.slane %v28_v4, 4 }
   0x8   :  { %v21_v7 = vrot.slane %v20_v5, 2  ;;  %v30_v8 = vadd.f32 %v29_v6, %v28_v4  ;;  %v18_v13 = vld [vmem:[#allocation2] sm:$0x1]  ;;  %v27_v16 = vld [vmem:[#allocation3] sm:$0x1] }
   0xa   :  { %v22_v9 = vadd.f32 %v21_v7, %v20_v5  ;;  %v31_v10 = vrot.slane %v30_v8, 2 }
   0xc   :  { %v23_v11 = vrot.slane %v22_v9, 1  ;;  %v32_v12 = vadd.f32 %v31_v10, %v30_v8 }
   0xe   :  { %v24_v14 = vadd.f32 %v23_v11, %v22_v9  ;;  %v33_v15 = vrot.slane %v32_v12, 1 }
  0x10   :  { %v25_v17 = vadd.f32 %v24_v14, %v18_v13  ;;  %v34_v18 = vadd.f32 %v33_v15, %v32_v12 }
  0x12   :  { %26 = vst [vmem:[#allocation2] sm:$0x1] %v25_v17  ;;  %v35_v19 = vadd.f32 %v34_v18, %v27_v16 }
  0x14   :  { %36 = vst [vmem:[#allocation3] sm:$0x1] %v35_v19 }
  0x19   :  { %v40_v20 = vld [vmem:[#allocation2] sm:$0x1] }
  0x1a   :  { %41 = vst [vmem:[%s79_s1] sm:$0x1] %v40_v20 }
  0x1b   :  { %v42_v21 = vld [vmem:[#allocation3] sm:$0x1] }
  0x1c   :  { %43 = vst [vmem:[%s80_s2] sm:$0x1] %v42_v21 }

// kernel: unet_forward.17
= control target key start
LH: loop header
LB: loop body
LE: loop exit
PB: predicated region body
PF: predicated region fallthrough
CT: control target
= control target key end

     0   :  { %s674_s18 = smov 0   ;;  %s676_s19 = smov 0   ;;  %s732_s0 = inlined_call_operand.vmem [shape: bf16[176,64], index: 0, kind: input, shape index: {}]   ;;  %s733_s1 = inlined_call_operand.vmem [shape: bf16[64,128], index: 1, kind: input, shape index: {}]   ;;  %s734_s2 = inlined_call_operand.vmem [shape: f32[1,64], index: 2, kind: input, shape index: {}]   ;;  %s735_s3 = inlined_call_operand.vmem [shape: f32[1,64], index: 3, kind: input, shape index: {}]   ;;  %s736_s4 = inlined_call_operand.vmem [shape: f32[1,128], index: 4, kind: input, shape index: {}]   ;;  %s737_s5 = inlined_call_operand.vmem [shape: f32[176,128], index: 5, kind: output, shape index: {}]  }
   0x1   :  { %s678_s20 = smov 0  }
   0x2 LB: > { %s27_s21 = sadd.s32 1, %s636_s19  ;;  %p548_p0 = scmp.ge.s32.totalorder %s640_s20, 1  ;;  %s640_s20 = sphi %s678_s20, %s15_s20   ;;  %s636_s19 = sphi %s676_s19, %s739_s19   ;;  %s632_s18 = sphi %s674_s18, %s738_s18  }
   0x3   : > { %p29_p1 = scmp.ge.s32.totalorder %s27_s21, 11  ;;  %p232_p2 = scmp.lt.s32.totalorder %s640_s20, 12 }
   0x5   : > { %s741_s21 = smov (%p29_p1, %s27_s21), 0  ;;  %p233_p3 = pnand %p548_p0, %p232_p2 }
   0x6   : > { %v610_v0 = vld [vmem:[%s733_s1] sm:$0xff] (!%p233_p3)   ;;  %v642_v1 = vmov (!%p233_p3), 0.0   ;;  %v611_v2 = vld [vmem:[%s733_s1 + $0x8] sm:$0xff] (!%p233_p3)   ;;  %vm643_vm0 = vmmov (!%p233_p3), 0   ;;  %s549_s26 = sshll.u32 (!%p233_p3), %s632_s18, 1  ;;  %v612_v3 = vld [vmem:[%s733_s1 + $0x10] sm:$0xff] (!%p233_p3)  }
   0x7   : > { %236 = sbr.rel (%p233_p3) target bundleno = 256 (0x100), region = 40  ;;  %572 = vmatprep.subr.bf16.mxu0 (!%p233_p3), %v642_v1  ;;  %580 = vmatprep.mubr.msk.bf16.mxu0 (!%p233_p3), %vm643_vm0, %v642_v1  ;;  %p275_p4 = scmp.lt.s32.totalorder (!%p233_p3), %s549_s26, 21  ;;  %v553_v5 = vld [vmem:[%s734_s2] ss:$0 sm:$0xff] (!%p233_p3)  ;;  %v613_v6 = vld [vmem:[%s733_s1 + $0x18] sm:$0xff] (!%p233_p3)   ;;  %vm367_vm1 = vcmask (!%p233_p3), 523264  }
   0x8   : > { %573 = vmatpush3.bf16.msra.mxu0 (!%p233_p3), %v610_v0  ;;  %v554_v9 = vld [vmem:[%s735_s3] ss:$0 sm:$0xff] (!%p233_p3) }
   0x9   : > { %574 = vmatprep.subr.bf16.mxu0 (!%p233_p3), %v642_v1  ;;  %v560_v17 = vld [vmem:[%s736_s4] ss:$0 sm:$0xff] (!%p233_p3) }
   0xc   : > { %575 = vmatpush3.bf16.msra.mxu0 (!%p233_p3), %v611_v2 }
   0xd   : > { %576 = vmatprep.subr.bf16.mxu0 (!%p233_p3), %v642_v1 }
   0xe   : > { %s743_s26 = smov (!%p275_p4, %s549_s26), 21 }
   0xf   : > { %s550_s29 = sshll.u32 %s743_s26, 2  ;;  %s552_s16 = sshll.u32 %s743_s26, 3 }
  0x10   : > { %s281_s7 = scalar_lea.vmem %s732_s0, %s550_s29  ;;  %577 = vmatpush3.bf16.msra.mxu0 %v612_v3  ;;  %s299_s22 = scalar_lea.vmem %s737_s5, %s552_s16 }
  0x11   : > { %v564_v4 = vld [vmem:[%s281_s7] sm:$0xff]   ;;  %578 = vmatprep.subr.bf16.mxu0 %v642_v1 }
  0x12   : > { %v565_v7 = vunpack.c.l.bf16 %v564_v4  ;;  %v566_v8 = vunpack.c.h.bf16 %v564_v4 }
  0x14   : > { %v319_v10 = vmul.f32 %v565_v7, %v553_v5  ;;  %v320_v11 = vmul.f32 %v566_v8, %v553_v5  ;;  %579 = vmatpush3.bf16.msra.mxu0 %v613_v6 }
  0x16   : > { %v328_v12 = vadd.f32 %v554_v9, %v319_v10  ;;  %v329_v13 = vadd.f32 %v554_v9, %v320_v11 }
  0x18   : > { %v330_v14 = vmax.f32 %v328_v12, 0.0  ;;  %v331_v15 = vmax.f32 %v329_v13, 0.0 }
  0x1a   : > { %v332_v16 = vpack.c.bf16 %v331_v15, %v330_v14 }
  0x1c   : > { %581 = vmatmul.mubr.msk.bf16.vlgmr.msra.gmra.mrb[0].mxu0 %vm367_vm1, %v332_v16 }
  0xef   : > { %v405_v18 = vpop.f32.mrb[0].mxu0 }
  0xf0   : > { %v428_v19 = vadd.f32 %v560_v17, %v405_v18  ;;  %v582_v20 = vpop.f32.mrb[1].mxu0 }
  0xf1   : > { %v408_v21 = vpop.f32.mrb[2].mxu0 }
  0xf2   : > { %614 = vtanh.f32 %v428_v19  ;;  %v429_v22 = vadd.f32 %v560_v17, %v408_v21  ;;  %v583_v23 = vpop.f32.mrb[3].mxu0 }
  0xf4   : > { %616 = vtanh.f32 %v429_v22 }
  0xfc   : > { %v615_v24 = vpop.eup %614 }
  0xfd   : > { %432 = vst [vmem:[%s299_s22] sm:$0xff] %v615_v24 }
  0xfe   : > { %v617_v25 = vpop.eup %616 }
  0xff   : > { %433 = vst [vmem:[%s299_s22 + $0x8] sm:$0xff] %v617_v25 }
 0x100 PF: > { %s15_s20 = sadd.s32 1, %s640_s20   ;;  %s738_s18 = smov %s636_s19 }
 0x101   : > { %p12_p5 = scmp.ge.s32.totalorder %s15_s20, 13   ;;  %s739_s19 = smov %s741_s21 }
 0x103   :  { %14 = sbr.rel (!%p12_p5) target bundleno = 2 (0x2), region = 87 }

</bundles_post_ra>
